<compile_context>
chip_gen: v5e
topology: v5e:2x2
jax: 0.10.0
libtpu: 0.0.40
codegen_flags: <defaults>
</compile_context>

<pallas_src>
import functools

import jax
import jax.numpy as jnp
import numpy as np
from jax.experimental import pallas as pl
from jax.experimental.pallas import tpu as pltpu

LRELU_SLOPE = 0.1
VMEM_LIMIT_BYTES = 32 * 1024 * 1024
LANE = 128


def _round_up(n, m):
    return ((n + m - 1) // m) * m


def _leaky(x, slope):
    return jnp.where(x >= 0, x, slope * x)


# --------------------------------------------------------------------------
# Pallas kernels
# --------------------------------------------------------------------------
def _linear_lrelu_kernel(x_ref, w_ref, b_ref, o_ref, *, slope):
    acc = jnp.dot(x_ref[...], w_ref[...], preferred_element_type=jnp.float32)
    o_ref[...] = _leaky(acc + b_ref[...], slope).astype(o_ref.dtype)


def _cdim_fused_kernel(*refs, n_layers, offs, rows, cpads, slope):
    """Whole conv stack + fc for ONE batch element (grid=(B,)).

    refs layout:
      [s0, w_0..w_{L-1}, b_0..b_{L-1}, sel_1..sel_{L-1}, fcw, fcb,   # inputs
       out,                                                          # output
       s_scratch_1..s_scratch_{L-1}]                                 # VMEM scratch
    """
    s0_ref = refs[0]
    w_refs = refs[1:1 + n_layers]
    b_refs = refs[1 + n_layers:1 + 2 * n_layers]
    sel_refs = refs[1 + 2 * n_layers:3 * n_layers]
    fcw_ref = refs[3 * n_layers]
    fcb_ref = refs[3 * n_layers + 1]
    o_ref = refs[3 * n_layers + 2]
    s_scrs = refs[3 * n_layers + 3:]

    def conv(load_lhs, li):
        # 4 tap-group matmuls, K = 4 * Cin_padded, f32 accumulation.
        acc = None
        for t, off in enumerate(offs[li]):
            part = jnp.dot(load_lhs(off, rows[li]), w_refs[li][t],
                           preferred_element_type=jnp.float32)
            acc = part if acc is None else acc + part
        return _leaky(acc + b_refs[li][...], slope)       # bias (BN folded) + lrelu

    load_lhs = lambda off, n: s0_ref[0, pl.ds(off, n), :]
    for li in range(n_layers):
        act = conv(load_lhs, li)                          # (rows_li, cpad_li) f32
        if li < n_layers - 1:
            # Re-phase into the next layer's space-to-depth buffer with constant
            # 0/1 selection matmuls (exact; zero rows realise the conv padding).
            act_bf = act.astype(jnp.bfloat16)
            scr, sel, cp = s_scrs[li], sel_refs[li], cpads[li]
            for pq in range(4):
                blk = jnp.dot(sel[pq], act_bf, preferred_element_type=jnp.float32)
                scr[:, pq * cp:(pq + 1) * cp] = blk.astype(jnp.bfloat16)
            load_lhs = (lambda s: (lambda off, n: s[pl.ds(off, n), :]))(scr)
        else:
            # Fused fc: junk wide-columns hit zero rows of the re-arranged fcw.
            prod = act * fcw_ref[...]                     # (rows_last, cpad) f32
            logit = jnp.sum(jnp.sum(prod, axis=0, keepdims=True),
                            axis=1, keepdims=True)        # (1, 1)
            o_ref[0] = (logit + fcb_ref[...]).astype(o_ref.dtype)


# --------------------------------------------------------------------------
# Pallas wrappers
# --------------------------------------------------------------------------
def linear_lrelu(x, w, b, *, slope=LRELU_SLOPE):
    """out = leaky_relu(x @ w + b); bf16 operands, f32 accumulation, bf16 out."""
    M, K = x.shape
    K2, N = w.shape
    assert K == K2
    kernel = functools.partial(_linear_lrelu_kernel, slope=slope)
    ce = pl.CostEstimate(flops=2 * M * N * K, transcendentals=0,
                         bytes_accessed=M * K * 2 + K * N * 2 + N * 4 + M * N * 2)
    return pl.pallas_call(
        kernel,
        grid=(1,),
        in_specs=[pl.BlockSpec((M, K), lambda i: (0, 0)),
                  pl.BlockSpec((K, N), lambda i: (0, 0)),
                  pl.BlockSpec((1, N), lambda i: (0, 0))],
        out_specs=pl.BlockSpec((M, N), lambda i: (0, 0)),
        out_shape=jax.ShapeDtypeStruct((M, N), jnp.bfloat16),
        compiler_params=pltpu.CompilerParams(
            dimension_semantics=("arbitrary",),
            vmem_limit_bytes=VMEM_LIMIT_BYTES),
        cost_estimate=ce,
    )(x.astype(jnp.bfloat16), w, b)


def cdim_fused(pp, s0):
    """Single fused pallas_call: all conv layers + fc, grid over batch."""
    B, R0, K0 = s0.shape
    geoms = pp["geoms"]
    n_layers = len(pp["w_slabs"])
    cpads = pp["cpads"]
    offs = tuple(g["offs"] for g in geoms)
    rows = tuple(g["rows"] for g in geoms)

    kernel = functools.partial(_cdim_fused_kernel, n_layers=n_layers,
                               offs=offs, rows=rows, cpads=cpads,
                               slope=LRELU_SLOPE)

    in_specs = [pl.BlockSpec((1, R0, K0), lambda b: (b, 0, 0))]
    operands = [s0]
    for w in pp["w_slabs"]:
        in_specs.append(pl.BlockSpec(w.shape, lambda b: (0, 0, 0)))
        operands.append(w)
    for bias in pp["b_folds"]:
        in_specs.append(pl.BlockSpec(bias.shape, lambda b: (0, 0)))
        operands.append(bias)
    for s in pp["sels"]:
        in_specs.append(pl.BlockSpec(s.shape, lambda b: (0, 0, 0)))
        operands.append(s)
    in_specs.append(pl.BlockSpec(pp["fcw_arr"].shape, lambda b: (0, 0)))
    operands.append(pp["fcw_arr"])
    in_specs.append(pl.BlockSpec((1, 1), lambda b: (0, 0)))
    operands.append(pp["fc_b"])

    scratch_shapes = [
        pltpu.VMEM((geoms[li + 1]["R"], 4 * cpads[li]), jnp.bfloat16)
        for li in range(n_layers - 1)
    ]

    flops = 0
    bytes_acc = s0.size * 2 + pp["fcw_arr"].size * 4 + 4 + B * 4
    for li, g in enumerate(geoms):
        k_t = pp["w_slabs"][li].shape[1]
        flops += 2 * 4 * g["rows"] * k_t * cpads[li]
        bytes_acc += pp["w_slabs"][li].size * 2 + pp["b_folds"][li].size * 4
        if li < n_layers - 1:
            flops += 2 * 4 * geoms[li + 1]["R"] * g["rows"] * cpads[li]
            bytes_acc += pp["sels"][li].size * 2
    flops += 2 * geoms[-1]["rows"] * cpads[-1]
    flops *= B
    ce = pl.CostEstimate(flops=int(flops), transcendentals=0,
                         bytes_accessed=int(bytes_acc))

    return pl.pallas_call(
        kernel,
        grid=(B,),
        in_specs=in_specs,
        out_specs=pl.BlockSpec((1, 1, 1), lambda b: (b, 0, 0)),
        out_shape=jax.ShapeDtypeStruct((B, 1, 1), jnp.float32),
        scratch_shapes=scratch_shapes,
        compiler_params=pltpu.CompilerParams(
            dimension_semantics=("parallel",),
            vmem_limit_bytes=VMEM_LIMIT_BYTES),
        cost_estimate=ce,
    )(*operands)


# --------------------------------------------------------------------------
# Host glue: ONE-TIME space-to-depth ("phase") view of the padded layer-0 input.
# Lane layout per row: (2p+q)*Cin + c, then zero-padded to 128 lanes.
# --------------------------------------------------------------------------
def build_s0(x_nchw, ymap_bf16, *, R0, k0):
    B, _, H, W = x_nchw.shape
    x = jnp.transpose(x_nchw, (0, 2, 3, 1)).astype(jnp.bfloat16)
    xc = jnp.concatenate([x, ymap_bf16], axis=-1)             # (B, H, W, Cin0)
    cin0 = xc.shape[-1]
    xp = jnp.pad(xc, ((0, 0), (1, 1), (1, 1), (0, 0)))        # pad=1
    Hh, Wh = H // 2 + 1, W // 2 + 1
    s = xp.reshape(B, Hh, 2, Wh, 2, cin0)
    s = jnp.transpose(s, (0, 1, 3, 2, 4, 5)).reshape(B, Hh * Wh, 4 * cin0)
    s = jnp.pad(s, ((0, 0), (0, R0 - Hh * Wh), (0, k0 - 4 * cin0)))
    return s                                                  # (B, R0, k0) bf16


def _layer_geoms(H, W, n_layers):
    geoms = []
    Hc, Wc = H, W
    for _ in range(n_layers):
        Ho, Wo = Hc // 2, Wc // 2
        Wh, Hh = Wo + 1, Ho + 1
        geoms.append(dict(Ho=Ho, Wo=Wo, Wh=Wh, Hh=Hh,
                          rows=Ho * Wh,
                          R=_round_up(Hh * Wh + 1, 8),
                          offs=(0, 1, Wh, Wh + 1)))
        Hc, Wc = Ho, Wo
    return geoms


def _build_sel(Ho_prev, Wo_prev, R_next):
    """0/1 matrices mapping a layer's wide output rows into the next layer's
    space-to-depth buffer rows, one matrix per 2x2 phase."""
    Wh_prev = Wo_prev + 1
    Wh_next = Wo_prev // 2 + 1
    sel = np.zeros((4, R_next, Ho_prev * Wh_prev), np.float32)
    for ho in range(Ho_prev):
        for wo in range(Wo_prev):
            r = ho * Wh_prev + wo
            i, p = (ho + 1) // 2, (ho + 1) % 2
            j, q = (wo + 1) // 2, (wo + 1) % 2
            sel[2 * p + q, i * Wh_next + j, r] = 1.0
    return jnp.asarray(sel, jnp.bfloat16)


# --------------------------------------------------------------------------
# Deterministic synthetic parameters (mirrors module __init__ shapes)
# --------------------------------------------------------------------------
def init_params(key, n_labels, embedding_dim, input_h, input_w,
                n_layers=3, kernel_size=4, conv_dim=32, is_rgb=True):
    a = LRELU_SLOPE
    gain = (2.0 / (1.0 + a * a)) ** 0.5
    keys = jax.random.split(key, 4 + 2 * n_layers)
    params = {"image_h": input_h, "image_w": input_w, "kernel_size": kernel_size}
    params["emb"] = jax.random.normal(keys[0], (n_labels, embedding_dim), jnp.float32)
    fan_in = embedding_dim
    params["proj1_w"] = jax.random.normal(
        keys[1], (embedding_dim, input_h * input_w), jnp.float32) * (gain / fan_in ** 0.5)
    params["proj1_b"] = jnp.zeros((input_h * input_w,), jnp.float32)

    in_ch = (3 if is_rgb else 1) + 1
    out_ch = conv_dim
    eps = 1e-5
    convs = []
    for i in range(n_layers):
        fan_in = in_ch * kernel_size * kernel_size
        w = jax.random.normal(keys[2 + 2 * i],
                              (kernel_size, kernel_size, in_ch, out_ch),
                              jnp.float32) * (gain / fan_in ** 0.5)
        b = jnp.zeros((out_ch,), jnp.float32)
        if i > 0:
            gamma = jnp.ones((out_ch,), jnp.float32)
            beta = jnp.zeros((out_ch,), jnp.float32)
            r_mean = jnp.zeros((out_ch,), jnp.float32)
            r_var = jnp.ones((out_ch,), jnp.float32)
            scale = gamma / jnp.sqrt(r_var + eps)
            shift = beta - r_mean * scale
        else:
            scale = jnp.ones((out_ch,), jnp.float32)
            shift = jnp.zeros((out_ch,), jnp.float32)
        convs.append({"w": w, "b": b, "scale": scale, "shift": shift})
        in_ch, out_ch = out_ch, out_ch * 2
    params["convs"] = convs

    out_h = input_h // 2 ** n_layers
    out_w = input_w // 2 ** n_layers
    fc_in = in_ch * out_h * out_w
    params["fc_w"] = jax.random.normal(keys[-1], (fc_in, 1), jnp.float32) * (1.0 / fc_in ** 0.5)
    params["fc_b"] = jnp.zeros((1,), jnp.float32)
    return params


def preprocess_params(params):
    """Fold eval-mode BN, build phase-packed tap-group weight slabs (channels
    zero-padded to 128 lanes), the inter-layer selection matrices, and the
    re-arranged fc weight."""
    H, W = params["image_h"], params["image_w"]
    k = params["kernel_size"]
    assert k == 4, "phase decomposition assumes kernel_size=4, stride=2, pad=1"
    convs = params["convs"]
    n_layers = len(convs)
    assert H % (2 ** n_layers) == 0 and W % (2 ** n_layers) == 0

    geoms = _layer_geoms(H, W, n_layers)
    pp = {"image_h": H, "image_w": W, "kernel_size": k,
          "emb": params["emb"],
          "proj1_w": params["proj1_w"].astype(jnp.bfloat16),
          "proj1_b": params["proj1_b"].reshape(1, -1).astype(jnp.float32),
          "geoms": geoms}

    w_slabs, b_folds, sels, cpads = [], [], [], []
    prev_cpad = None
    for li, (layer, g) in enumerate(zip(convs, geoms)):
        w = np.asarray(layer["w"], np.float32)               # (k, k, Cin, Cout)
        cin, cout = w.shape[2], w.shape[3]
        cpad = _round_up(cout, LANE)
        scale = np.asarray(layer["scale"], np.float32)
        shift = np.asarray(layer["shift"], np.float32)
        wf = w * scale[None, None, None, :]
        bf = np.asarray(layer["b"], np.float32) * scale + shift
        if li == 0:
            cin_stride = cin
            k_total = _round_up(4 * cin, LANE)
        else:
            cin_stride = prev_cpad
            k_total = 4 * prev_cpad
        slab = np.zeros((4, k_total, cpad), np.float32)
        for di in range(2):
            for dj in range(2):
                t = 2 * di + dj
                for p in range(2):
                    for q in range(2):
                        pq = 2 * p + q
                        slab[t, pq * cin_stride:pq * cin_stride + cin, :cout] = \
                            wf[2 * di + p, 2 * dj + q]
        w_slabs.append(jnp.asarray(slab, jnp.bfloat16))
        b_pad = np.zeros((1, cpad), np.float32)
        b_pad[0, :cout] = bf
        b_folds.append(jnp.asarray(b_pad, jnp.float32))
        if li > 0:
            gp = geoms[li - 1]
            sels.append(_build_sel(gp["Ho"], gp["Wo"], g["R"]))
        cpads.append(cpad)
        prev_cpad = cpad

    pp["w_slabs"] = w_slabs
    pp["b_folds"] = b_folds
    pp["sels"] = sels
    pp["cpads"] = tuple(cpads)
    pp["k0"] = int(w_slabs[0].shape[1])

    # fc weight re-arranged into the last conv's "wide" layout (junk column zeroed)
    g_last = geoms[-1]
    c_last = convs[-1]["w"].shape[3]
    cpad_last = cpads[-1]
    fcw = np.asarray(params["fc_w"], np.float32).reshape(c_last, g_last["Ho"], g_last["Wo"])
    fcw = np.transpose(fcw, (1, 2, 0))                        # (Ho, Wo, C)
    fcw_full = np.zeros((g_last["Ho"], g_last["Wh"], cpad_last), np.float32)
    fcw_full[:, :g_last["Wo"], :c_last] = fcw
    pp["fcw_arr"] = jnp.asarray(fcw_full.reshape(g_last["rows"], cpad_last), jnp.float32)
    pp["fc_b"] = params["fc_b"].reshape(1, 1).astype(jnp.float32)
    return pp


# --------------------------------------------------------------------------
# Forward pass
# --------------------------------------------------------------------------
def cdim_forward(pp, x_nchw, y_labels):
    B = x_nchw.shape[0]
    H, W = pp["image_h"], pp["image_w"]
    geoms = pp["geoms"]

    # embedding lookup (tiny gather; host glue, fused by the surrounding jit)
    e = pp["emb"][y_labels]                                   # (B, E)

    # proj1 + LeakyReLU (Pallas matmul, bf16 out)
    yproj = linear_lrelu(e, pp["proj1_w"], pp["proj1_b"])     # (B, H*W) bf16
    ymap = yproj.reshape(B, H, W, 1)

    # TODO(synk): GaussianNoise definition not provided; identity in eval mode.

    # one-time space-to-depth prep of the layer-0 input (x channels + label map)
    s0 = build_s0(x_nchw, ymap, R0=geoms[0]["R"], k0=pp["k0"])

    # fused conv stack + fc, one pallas_call, grid over batch
    logits = cdim_fused(pp, s0)                               # (B, 1, 1) f32
    return logits.reshape(B, 1)


if __name__ == "__main__":
    key = jax.random.PRNGKey(0)
    B, n_labels, E, H, W = 2, 10, 8, 16, 16
    conv_dim, n_layers = 32, 3

    raw = init_params(key, n_labels, E, H, W, n_layers=n_layers,
                      kernel_size=4, conv_dim=conv_dim, is_rgb=True)
    pp = preprocess_params(raw)

    kx, ky = jax.random.split(jax.random.fold_in(key, 1))
    x = jax.random.normal(kx, (B, 3, H, W), jnp.float32)      # NCHW, like torch
    y = jax.random.randint(ky, (B,), 0, n_labels)

    fwd = jax.jit(functools.partial(cdim_forward, pp))
    out = jax.block_until_ready(fwd(x, y))
    assert out.shape == (B, 1) and out.dtype == jnp.float32
    print("KERNEL_OK")
</pallas_src>

<mosaic_0001>
module attributes {stable_mosaic.version = 11 : i64} {
  func.func @_linear_lrelu_kernel(%arg0: i32, %arg1: memref<2x8xbf16, #tpu.memory_space<vmem>>, %arg2: memref<8x256xbf16, #tpu.memory_space<vmem>>, %arg3: memref<1x256xf32, #tpu.memory_space<vmem>>, %arg4: memref<2x256xbf16, #tpu.memory_space<vmem>>) attributes {dimension_semantics = [#tpu.dimension_semantics<arbitrary>], iteration_bounds = array<i64: 1>, scalar_prefetch = 0 : i64, scratch_operands = 0 : i64, tpu.core_type = #tpu.core_type<tc>, window_params = [{pipeline_mode = #tpu.pipeline_mode<synchronous>, transform_indices = @transform_0, window_bounds = array<i64: 2, 8>}, {pipeline_mode = #tpu.pipeline_mode<synchronous>, transform_indices = @transform_1, window_bounds = array<i64: 8, 256>}, {pipeline_mode = #tpu.pipeline_mode<synchronous>, transform_indices = @transform_2, window_bounds = array<i64: 1, 256>}, {pipeline_mode = #tpu.pipeline_mode<synchronous>, transform_indices = @transform_3, window_bounds = array<i64: 2, 256>}]} {
    %c0 = arith.constant 0 : index
    %c0_0 = arith.constant 0 : index
    %0 = vector.load %arg1[%c0, %c0_0] : memref<2x8xbf16, #tpu.memory_space<vmem>>, vector<2x8xbf16>
    %c0_1 = arith.constant 0 : index
    %c0_2 = arith.constant 0 : index
    %1 = vector.load %arg2[%c0_1, %c0_2] : memref<8x256xbf16, #tpu.memory_space<vmem>>, vector<8x256xbf16>
    %cst = arith.constant dense<0.000000e+00> : vector<2x256xf32>
    %2 = tpu.matmul %0, %1, %cst {dimension_numbers = #tpu.dot_dimension_numbers<[1], [0], [0], [1], [0, 0, 1, 1], [], []>} : vector<2x8xbf16>, vector<8x256xbf16>, vector<2x256xf32> -> vector<2x256xf32>
    %c0_3 = arith.constant 0 : index
    %c0_4 = arith.constant 0 : index
    %3 = vector.load %arg3[%c0_3, %c0_4] : memref<1x256xf32, #tpu.memory_space<vmem>>, vector<1x256xf32>
    %4 = vector.broadcast %3 : vector<1x256xf32> to vector<2x256xf32>
    %5 = arith.addf %2, %4 : vector<2x256xf32>
    %cst_5 = arith.constant 0.000000e+00 : f32
    %6 = vector.broadcast %cst_5 : f32 to vector<2x256xf32>
    %7 = arith.cmpf oge, %5, %6 : vector<2x256xf32>
    %cst_6 = arith.constant 1.000000e-01 : f32
    %8 = vector.broadcast %cst_6 : f32 to vector<2x256xf32>
    %9 = arith.mulf %8, %5 : vector<2x256xf32>
    %10 = arith.select %7, %5, %9 : vector<2x256xi1>, vector<2x256xf32>
    %11 = arith.truncf %10 : vector<2x256xf32> to vector<2x256xbf16>
    %c0_7 = arith.constant 0 : index
    %c0_8 = arith.constant 0 : index
    %12 = vector.load %arg4[%c0_7, %c0_8] : memref<2x256xbf16, #tpu.memory_space<vmem>>, vector<2x256xbf16>
    tpu.vector_store %arg4[%c0_7, %c0_8], %11 {strides = array<i32>} : memref<2x256xbf16, #tpu.memory_space<vmem>>, vector<2x256xbf16>,
    return
  }
  func.func @transform_0(%arg0: i32) -> (i32, i32) {
    %c0_i32 = arith.constant 0 : i32
    %c0_i32_0 = arith.constant 0 : i32
    %c0_i32_1 = arith.constant 0 : i32
    return %c0_i32, %c0_i32_0 : i32, i32
  }
  func.func @transform_1(%arg0: i32) -> (i32, i32) {
    %c0_i32 = arith.constant 0 : i32
    %c0_i32_0 = arith.constant 0 : i32
    %c0_i32_1 = arith.constant 0 : i32
    return %c0_i32, %c0_i32_0 : i32, i32
  }
  func.func @transform_2(%arg0: i32) -> (i32, i32) {
    %c0_i32 = arith.constant 0 : i32
    %c0_i32_0 = arith.constant 0 : i32
    %c0_i32_1 = arith.constant 0 : i32
    return %c0_i32, %c0_i32_0 : i32, i32
  }
  func.func @transform_3(%arg0: i32) -> (i32, i32) {
    %c0_i32 = arith.constant 0 : i32
    %c0_i32_0 = arith.constant 0 : i32
    %c0_i32_1 = arith.constant 0 : i32
    return %c0_i32, %c0_i32_0 : i32, i32
  }
}

module attributes {stable_mosaic.version = 11 : i64} {
  func.func @_cdim_fused_kernel(%arg0: i32, %arg1: memref<1x88x128xbf16, #tpu.memory_space<vmem>>, %arg2: memref<4x128x128xbf16, #tpu.memory_space<vmem>>, %arg3: memref<4x512x128xbf16, #tpu.memory_space<vmem>>, %arg4: memref<4x512x128xbf16, #tpu.memory_space<vmem>>, %arg5: memref<1x128xf32, #tpu.memory_space<vmem>>, %arg6: memref<1x128xf32, #tpu.memory_space<vmem>>, %arg7: memref<1x128xf32, #tpu.memory_space<vmem>>, %arg8: memref<4x32x72xbf16, #tpu.memory_space<vmem>>, %arg9: memref<4x16x20xbf16, #tpu.memory_space<vmem>>, %arg10: memref<6x128xf32, #tpu.memory_space<vmem>>, %arg11: memref<1x1xf32, #tpu.memory_space<vmem>>, %arg12: memref<1x1x1xf32, #tpu.memory_space<vmem>>, %arg13: memref<32x512xbf16, #tpu.memory_space<vmem>>, %arg14: memref<16x512xbf16, #tpu.memory_space<vmem>>) attributes {dimension_semantics = [#tpu.dimension_semantics<parallel>], iteration_bounds = array<i64: 2>, scalar_prefetch = 0 : i64, scratch_operands = 2 : i64, tpu.core_type = #tpu.core_type<tc>, window_params = [{transform_indices = @transform_0, window_bounds = array<i64: 1, 88, 128>}, {pipeline_mode = #tpu.pipeline_mode<synchronous>, transform_indices = @transform_1, window_bounds = array<i64: 4, 128, 128>}, {pipeline_mode = #tpu.pipeline_mode<synchronous>, transform_indices = @transform_2, window_bounds = array<i64: 4, 512, 128>}, {pipeline_mode = #tpu.pipeline_mode<synchronous>, transform_indices = @transform_3, window_bounds = array<i64: 4, 512, 128>}, {pipeline_mode = #tpu.pipeline_mode<synchronous>, transform_indices = @transform_4, window_bounds = array<i64: 1, 128>}, {pipeline_mode = #tpu.pipeline_mode<synchronous>, transform_indices = @transform_5, window_bounds = array<i64: 1, 128>}, {pipeline_mode = #tpu.pipeline_mode<synchronous>, transform_indices = @transform_6, window_bounds = array<i64: 1, 128>}, {pipeline_mode = #tpu.pipeline_mode<synchronous>, transform_indices = @transform_7, window_bounds = array<i64: 4, 32, 72>}, {pipeline_mode = #tpu.pipeline_mode<synchronous>, transform_indices = @transform_8, window_bounds = array<i64: 4, 16, 20>}, {pipeline_mode = #tpu.pipeline_mode<synchronous>, transform_indices = @transform_9, window_bounds = array<i64: 6, 128>}, {pipeline_mode = #tpu.pipeline_mode<synchronous>, transform_indices = @transform_10, window_bounds = array<i64: 1, 1>}, {transform_indices = @transform_11, window_bounds = array<i64: 1, 1, 1>}]} {
    %c0 = arith.constant 0 : index
    %c0_0 = arith.constant 0 : index
    %c0_1 = arith.constant 0 : index
    %0 = vector.load %arg1[%c0, %c0_0, %c0_1] : memref<1x88x128xbf16, #tpu.memory_space<vmem>>, vector<1x72x128xbf16>
    %1 = vector.shape_cast %0 : vector<1x72x128xbf16> to vector<72x128xbf16>
    %c0_2 = arith.constant 0 : index
    %c0_3 = arith.constant 0 : index
    %c0_4 = arith.constant 0 : index
    %2 = vector.load %arg2[%c0_2, %c0_3, %c0_4] : memref<4x128x128xbf16, #tpu.memory_space<vmem>>, vector<1x128x128xbf16>
    %3 = vector.shape_cast %2 : vector<1x128x128xbf16> to vector<128x128xbf16>
    %cst = arith.constant dense<0.000000e+00> : vector<72x128xf32>
    %4 = tpu.matmul %1, %3, %cst {dimension_numbers = #tpu.dot_dimension_numbers<[1], [0], [0], [1], [0, 0, 1, 1], [], []>} : vector<72x128xbf16>, vector<128x128xbf16>, vector<72x128xf32> -> vector<72x128xf32>
    %c0_5 = arith.constant 0 : index
    %c1 = arith.constant 1 : index
    %c0_6 = arith.constant 0 : index
    %5 = vector.load %arg1[%c0_5, %c1, %c0_6] : memref<1x88x128xbf16, #tpu.memory_space<vmem>>, vector<1x72x128xbf16>
    %6 = vector.shape_cast %5 : vector<1x72x128xbf16> to vector<72x128xbf16>
    %c1_7 = arith.constant 1 : index
    %c0_8 = arith.constant 0 : index
    %c0_9 = arith.constant 0 : index
    %7 = vector.load %arg2[%c1_7, %c0_8, %c0_9] : memref<4x128x128xbf16, #tpu.memory_space<vmem>>, vector<1x128x128xbf16>
    %8 = vector.shape_cast %7 : vector<1x128x128xbf16> to vector<128x128xbf16>
    %cst_10 = arith.constant dense<0.000000e+00> : vector<72x128xf32>
    %9 = tpu.matmul %6, %8, %cst_10 {dimension_numbers = #tpu.dot_dimension_numbers<[1], [0], [0], [1], [0, 0, 1, 1], [], []>} : vector<72x128xbf16>, vector<128x128xbf16>, vector<72x128xf32> -> vector<72x128xf32>
    %10 = arith.addf %4, %9 : vector<72x128xf32>
    %c0_11 = arith.constant 0 : index
    %c9 = arith.constant 9 : index
    %c0_12 = arith.constant 0 : index
    %11 = vector.load %arg1[%c0_11, %c9, %c0_12] : memref<1x88x128xbf16, #tpu.memory_space<vmem>>, vector<1x72x128xbf16>
    %12 = vector.shape_cast %11 : vector<1x72x128xbf16> to vector<72x128xbf16>
    %c2 = arith.constant 2 : index
    %c0_13 = arith.constant 0 : index
    %c0_14 = arith.constant 0 : index
    %13 = vector.load %arg2[%c2, %c0_13, %c0_14] : memref<4x128x128xbf16, #tpu.memory_space<vmem>>, vector<1x128x128xbf16>
    %14 = vector.shape_cast %13 : vector<1x128x128xbf16> to vector<128x128xbf16>
    %cst_15 = arith.constant dense<0.000000e+00> : vector<72x128xf32>
    %15 = tpu.matmul %12, %14, %cst_15 {dimension_numbers = #tpu.dot_dimension_numbers<[1], [0], [0], [1], [0, 0, 1, 1], [], []>} : vector<72x128xbf16>, vector<128x128xbf16>, vector<72x128xf32> -> vector<72x128xf32>
    %16 = arith.addf %10, %15 : vector<72x128xf32>
    %c0_16 = arith.constant 0 : index
    %c10 = arith.constant 10 : index
    %c0_17 = arith.constant 0 : index
    %17 = vector.load %arg1[%c0_16, %c10, %c0_17] : memref<1x88x128xbf16, #tpu.memory_space<vmem>>, vector<1x72x128xbf16>
    %18 = vector.shape_cast %17 : vector<1x72x128xbf16> to vector<72x128xbf16>
    %c3 = arith.constant 3 : index
    %c0_18 = arith.constant 0 : index
    %c0_19 = arith.constant 0 : index
    %19 = vector.load %arg2[%c3, %c0_18, %c0_19] : memref<4x128x128xbf16, #tpu.memory_space<vmem>>, vector<1x128x128xbf16>
    %20 = vector.shape_cast %19 : vector<1x128x128xbf16> to vector<128x128xbf16>
    %cst_20 = arith.constant dense<0.000000e+00> : vector<72x128xf32>
    %21 = tpu.matmul %18, %20, %cst_20 {dimension_numbers = #tpu.dot_dimension_numbers<[1], [0], [0], [1], [0, 0, 1, 1], [], []>} : vector<72x128xbf16>, vector<128x128xbf16>, vector<72x128xf32> -> vector<72x128xf32>
    %22 = arith.addf %16, %21 : vector<72x128xf32>
    %c0_21 = arith.constant 0 : index
    %c0_22 = arith.constant 0 : index
    %23 = vector.load %arg5[%c0_21, %c0_22] : memref<1x128xf32, #tpu.memory_space<vmem>>, vector<1x128xf32>
    %24 = vector.broadcast %23 : vector<1x128xf32> to vector<72x128xf32>
    %25 = arith.addf %22, %24 : vector<72x128xf32>
    %cst_23 = arith.constant 0.000000e+00 : f32
    %26 = vector.broadcast %cst_23 : f32 to vector<72x128xf32>
    %27 = arith.cmpf oge, %25, %26 : vector<72x128xf32>
    %cst_24 = arith.constant 1.000000e-01 : f32
    %28 = vector.broadcast %cst_24 : f32 to vector<72x128xf32>
    %29 = arith.mulf %28, %25 : vector<72x128xf32>
    %30 = arith.select %27, %25, %29 : vector<72x128xi1>, vector<72x128xf32>
    %31 = arith.truncf %30 : vector<72x128xf32> to vector<72x128xbf16>
    %c0_25 = arith.constant 0 : index
    %c0_26 = arith.constant 0 : index
    %c0_27 = arith.constant 0 : index
    %32 = vector.load %arg8[%c0_25, %c0_26, %c0_27] : memref<4x32x72xbf16, #tpu.memory_space<vmem>>, vector<1x32x72xbf16>
    %33 = vector.shape_cast %32 : vector<1x32x72xbf16> to vector<32x72xbf16>
    %cst_28 = arith.constant dense<0.000000e+00> : vector<32x128xf32>
    %34 = tpu.matmul %33, %31, %cst_28 {dimension_numbers = #tpu.dot_dimension_numbers<[1], [0], [0], [1], [0, 0, 1, 1], [], []>} : vector<32x72xbf16>, vector<72x128xbf16>, vector<32x128xf32> -> vector<32x128xf32>
    %35 = arith.truncf %34 : vector<32x128xf32> to vector<32x128xbf16>
    %c0_29 = arith.constant 0 : index
    %c0_30 = arith.constant 0 : index
    %36 = vector.load %arg13[%c0_29, %c0_30] : memref<32x512xbf16, #tpu.memory_space<vmem>>, vector<32x128xbf16>
    tpu.vector_store %arg13[%c0_29, %c0_30], %35 {strides = array<i32>} : memref<32x512xbf16, #tpu.memory_space<vmem>>, vector<32x128xbf16>,
    %c1_31 = arith.constant 1 : index
    %c0_32 = arith.constant 0 : index
    %c0_33 = arith.constant 0 : index
    %37 = vector.load %arg8[%c1_31, %c0_32, %c0_33] : memref<4x32x72xbf16, #tpu.memory_space<vmem>>, vector<1x32x72xbf16>
    %38 = vector.shape_cast %37 : vector<1x32x72xbf16> to vector<32x72xbf16>
    %cst_34 = arith.constant dense<0.000000e+00> : vector<32x128xf32>
    %39 = tpu.matmul %38, %31, %cst_34 {dimension_numbers = #tpu.dot_dimension_numbers<[1], [0], [0], [1], [0, 0, 1, 1], [], []>} : vector<32x72xbf16>, vector<72x128xbf16>, vector<32x128xf32> -> vector<32x128xf32>
    %40 = arith.truncf %39 : vector<32x128xf32> to vector<32x128xbf16>
    %c0_35 = arith.constant 0 : index
    %c128 = arith.constant 128 : index
    %41 = vector.load %arg13[%c0_35, %c128] : memref<32x512xbf16, #tpu.memory_space<vmem>>, vector<32x128xbf16>
    tpu.vector_store %arg13[%c0_35, %c128], %40 {strides = array<i32>} : memref<32x512xbf16, #tpu.memory_space<vmem>>, vector<32x128xbf16>,
    %c2_36 = arith.constant 2 : index
    %c0_37 = arith.constant 0 : index
    %c0_38 = arith.constant 0 : index
    %42 = vector.load %arg8[%c2_36, %c0_37, %c0_38] : memref<4x32x72xbf16, #tpu.memory_space<vmem>>, vector<1x32x72xbf16>
    %43 = vector.shape_cast %42 : vector<1x32x72xbf16> to vector<32x72xbf16>
    %cst_39 = arith.constant dense<0.000000e+00> : vector<32x128xf32>
    %44 = tpu.matmul %43, %31, %cst_39 {dimension_numbers = #tpu.dot_dimension_numbers<[1], [0], [0], [1], [0, 0, 1, 1], [], []>} : vector<32x72xbf16>, vector<72x128xbf16>, vector<32x128xf32> -> vector<32x128xf32>
    %45 = arith.truncf %44 : vector<32x128xf32> to vector<32x128xbf16>
    %c0_40 = arith.constant 0 : index
    %c256 = arith.constant 256 : index
    %46 = vector.load %arg13[%c0_40, %c256] : memref<32x512xbf16, #tpu.memory_space<vmem>>, vector<32x128xbf16>
    tpu.vector_store %arg13[%c0_40, %c256], %45 {strides = array<i32>} : memref<32x512xbf16, #tpu.memory_space<vmem>>, vector<32x128xbf16>,
    %c3_41 = arith.constant 3 : index
    %c0_42 = arith.constant 0 : index
    %c0_43 = arith.constant 0 : index
    %47 = vector.load %arg8[%c3_41, %c0_42, %c0_43] : memref<4x32x72xbf16, #tpu.memory_space<vmem>>, vector<1x32x72xbf16>
    %48 = vector.shape_cast %47 : vector<1x32x72xbf16> to vector<32x72xbf16>
    %cst_44 = arith.constant dense<0.000000e+00> : vector<32x128xf32>
    %49 = tpu.matmul %48, %31, %cst_44 {dimension_numbers = #tpu.dot_dimension_numbers<[1], [0], [0], [1], [0, 0, 1, 1], [], []>} : vector<32x72xbf16>, vector<72x128xbf16>, vector<32x128xf32> -> vector<32x128xf32>
    %50 = arith.truncf %49 : vector<32x128xf32> to vector<32x128xbf16>
    %c0_45 = arith.constant 0 : index
    %c384 = arith.constant 384 : index
    %51 = vector.load %arg13[%c0_45, %c384] : memref<32x512xbf16, #tpu.memory_space<vmem>>, vector<32x128xbf16>
    tpu.vector_store %arg13[%c0_45, %c384], %50 {strides = array<i32>} : memref<32x512xbf16, #tpu.memory_space<vmem>>, vector<32x128xbf16>,
    %c0_46 = arith.constant 0 : index
    %c0_47 = arith.constant 0 : index
    %52 = vector.load %arg13[%c0_46, %c0_47] : memref<32x512xbf16, #tpu.memory_space<vmem>>, vector<20x512xbf16>
    %c0_48 = arith.constant 0 : index
    %c0_49 = arith.constant 0 : index
    %c0_50 = arith.constant 0 : index
    %53 = vector.load %arg3[%c0_48, %c0_49, %c0_50] : memref<4x512x128xbf16, #tpu.memory_space<vmem>>, vector<1x512x128xbf16>
    %54 = vector.shape_cast %53 : vector<1x512x128xbf16> to vector<512x128xbf16>
    %cst_51 = arith.constant dense<0.000000e+00> : vector<20x128xf32>
    %55 = tpu.matmul %52, %54, %cst_51 {dimension_numbers = #tpu.dot_dimension_numbers<[1], [0], [0], [1], [0, 0, 1, 1], [], []>} : vector<20x512xbf16>, vector<512x128xbf16>, vector<20x128xf32> -> vector<20x128xf32>
    %c1_52 = arith.constant 1 : index
    %c0_53 = arith.constant 0 : index
    %56 = vector.load %arg13[%c1_52, %c0_53] : memref<32x512xbf16, #tpu.memory_space<vmem>>, vector<20x512xbf16>
    %c1_54 = arith.constant 1 : index
    %c0_55 = arith.constant 0 : index
    %c0_56 = arith.constant 0 : index
    %57 = vector.load %arg3[%c1_54, %c0_55, %c0_56] : memref<4x512x128xbf16, #tpu.memory_space<vmem>>, vector<1x512x128xbf16>
    %58 = vector.shape_cast %57 : vector<1x512x128xbf16> to vector<512x128xbf16>
    %cst_57 = arith.constant dense<0.000000e+00> : vector<20x128xf32>
    %59 = tpu.matmul %56, %58, %cst_57 {dimension_numbers = #tpu.dot_dimension_numbers<[1], [0], [0], [1], [0, 0, 1, 1], [], []>} : vector<20x512xbf16>, vector<512x128xbf16>, vector<20x128xf32> -> vector<20x128xf32>
    %60 = arith.addf %55, %59 : vector<20x128xf32>
    %c5 = arith.constant 5 : index
    %c0_58 = arith.constant 0 : index
    %61 = vector.load %arg13[%c5, %c0_58] : memref<32x512xbf16, #tpu.memory_space<vmem>>, vector<20x512xbf16>
    %c2_59 = arith.constant 2 : index
    %c0_60 = arith.constant 0 : index
    %c0_61 = arith.constant 0 : index
    %62 = vector.load %arg3[%c2_59, %c0_60, %c0_61] : memref<4x512x128xbf16, #tpu.memory_space<vmem>>, vector<1x512x128xbf16>
    %63 = vector.shape_cast %62 : vector<1x512x128xbf16> to vector<512x128xbf16>
    %cst_62 = arith.constant dense<0.000000e+00> : vector<20x128xf32>
    %64 = tpu.matmul %61, %63, %cst_62 {dimension_numbers = #tpu.dot_dimension_numbers<[1], [0], [0], [1], [0, 0, 1, 1], [], []>} : vector<20x512xbf16>, vector<512x128xbf16>, vector<20x128xf32> -> vector<20x128xf32>
    %65 = arith.addf %60, %64 : vector<20x128xf32>
    %c6 = arith.constant 6 : index
    %c0_63 = arith.constant 0 : index
    %66 = vector.load %arg13[%c6, %c0_63] : memref<32x512xbf16, #tpu.memory_space<vmem>>, vector<20x512xbf16>
    %c3_64 = arith.constant 3 : index
    %c0_65 = arith.constant 0 : index
    %c0_66 = arith.constant 0 : index
    %67 = vector.load %arg3[%c3_64, %c0_65, %c0_66] : memref<4x512x128xbf16, #tpu.memory_space<vmem>>, vector<1x512x128xbf16>
    %68 = vector.shape_cast %67 : vector<1x512x128xbf16> to vector<512x128xbf16>
    %cst_67 = arith.constant dense<0.000000e+00> : vector<20x128xf32>
    %69 = tpu.matmul %66, %68, %cst_67 {dimension_numbers = #tpu.dot_dimension_numbers<[1], [0], [0], [1], [0, 0, 1, 1], [], []>} : vector<20x512xbf16>, vector<512x128xbf16>, vector<20x128xf32> -> vector<20x128xf32>
    %70 = arith.addf %65, %69 : vector<20x128xf32>
    %c0_68 = arith.constant 0 : index
    %c0_69 = arith.constant 0 : index
    %71 = vector.load %arg6[%c0_68, %c0_69] : memref<1x128xf32, #tpu.memory_space<vmem>>, vector<1x128xf32>
    %72 = vector.broadcast %71 : vector<1x128xf32> to vector<20x128xf32>
    %73 = arith.addf %70, %72 : vector<20x128xf32>
    %cst_70 = arith.constant 0.000000e+00 : f32
    %74 = vector.broadcast %cst_70 : f32 to vector<20x128xf32>
    %75 = arith.cmpf oge, %73, %74 : vector<20x128xf32>
    %cst_71 = arith.constant 1.000000e-01 : f32
    %76 = vector.broadcast %cst_71 : f32 to vector<20x128xf32>
    %77 = arith.mulf %76, %73 : vector<20x128xf32>
    %78 = arith.select %75, %73, %77 : vector<20x128xi1>, vector<20x128xf32>
    %79 = arith.truncf %78 : vector<20x128xf32> to vector<20x128xbf16>
    %c0_72 = arith.constant 0 : index
    %c0_73 = arith.constant 0 : index
    %c0_74 = arith.constant 0 : index
    %80 = vector.load %arg9[%c0_72, %c0_73, %c0_74] : memref<4x16x20xbf16, #tpu.memory_space<vmem>>, vector<1x16x20xbf16>
    %81 = vector.shape_cast %80 : vector<1x16x20xbf16> to vector<16x20xbf16>
    %cst_75 = arith.constant dense<0.000000e+00> : vector<16x128xf32>
    %82 = tpu.matmul %81, %79, %cst_75 {dimension_numbers = #tpu.dot_dimension_numbers<[1], [0], [0], [1], [0, 0, 1, 1], [], []>} : vector<16x20xbf16>, vector<20x128xbf16>, vector<16x128xf32> -> vector<16x128xf32>
    %83 = arith.truncf %82 : vector<16x128xf32> to vector<16x128xbf16>
    %c0_76 = arith.constant 0 : index
    %c0_77 = arith.constant 0 : index
    %84 = vector.load %arg14[%c0_76, %c0_77] : memref<16x512xbf16, #tpu.memory_space<vmem>>, vector<16x128xbf16>
    tpu.vector_store %arg14[%c0_76, %c0_77], %83 {strides = array<i32>} : memref<16x512xbf16, #tpu.memory_space<vmem>>, vector<16x128xbf16>,
    %c1_78 = arith.constant 1 : index
    %c0_79 = arith.constant 0 : index
    %c0_80 = arith.constant 0 : index
    %85 = vector.load %arg9[%c1_78, %c0_79, %c0_80] : memref<4x16x20xbf16, #tpu.memory_space<vmem>>, vector<1x16x20xbf16>
    %86 = vector.shape_cast %85 : vector<1x16x20xbf16> to vector<16x20xbf16>
    %cst_81 = arith.constant dense<0.000000e+00> : vector<16x128xf32>
    %87 = tpu.matmul %86, %79, %cst_81 {dimension_numbers = #tpu.dot_dimension_numbers<[1], [0], [0], [1], [0, 0, 1, 1], [], []>} : vector<16x20xbf16>, vector<20x128xbf16>, vector<16x128xf32> -> vector<16x128xf32>
    %88 = arith.truncf %87 : vector<16x128xf32> to vector<16x128xbf16>
    %c0_82 = arith.constant 0 : index
    %c128_83 = arith.constant 128 : index
    %89 = vector.load %arg14[%c0_82, %c128_83] : memref<16x512xbf16, #tpu.memory_space<vmem>>, vector<16x128xbf16>
    tpu.vector_store %arg14[%c0_82, %c128_83], %88 {strides = array<i32>} : memref<16x512xbf16, #tpu.memory_space<vmem>>, vector<16x128xbf16>,
    %c2_84 = arith.constant 2 : index
    %c0_85 = arith.constant 0 : index
    %c0_86 = arith.constant 0 : index
    %90 = vector.load %arg9[%c2_84, %c0_85, %c0_86] : memref<4x16x20xbf16, #tpu.memory_space<vmem>>, vector<1x16x20xbf16>
    %91 = vector.shape_cast %90 : vector<1x16x20xbf16> to vector<16x20xbf16>
    %cst_87 = arith.constant dense<0.000000e+00> : vector<16x128xf32>
    %92 = tpu.matmul %91, %79, %cst_87 {dimension_numbers = #tpu.dot_dimension_numbers<[1], [0], [0], [1], [0, 0, 1, 1], [], []>} : vector<16x20xbf16>, vector<20x128xbf16>, vector<16x128xf32> -> vector<16x128xf32>
    %93 = arith.truncf %92 : vector<16x128xf32> to vector<16x128xbf16>
    %c0_88 = arith.constant 0 : index
    %c256_89 = arith.constant 256 : index
    %94 = vector.load %arg14[%c0_88, %c256_89] : memref<16x512xbf16, #tpu.memory_space<vmem>>, vector<16x128xbf16>
    tpu.vector_store %arg14[%c0_88, %c256_89], %93 {strides = array<i32>} : memref<16x512xbf16, #tpu.memory_space<vmem>>, vector<16x128xbf16>,
    %c3_90 = arith.constant 3 : index
    %c0_91 = arith.constant 0 : index
    %c0_92 = arith.constant 0 : index
    %95 = vector.load %arg9[%c3_90, %c0_91, %c0_92] : memref<4x16x20xbf16, #tpu.memory_space<vmem>>, vector<1x16x20xbf16>
    %96 = vector.shape_cast %95 : vector<1x16x20xbf16> to vector<16x20xbf16>
    %cst_93 = arith.constant dense<0.000000e+00> : vector<16x128xf32>
    %97 = tpu.matmul %96, %79, %cst_93 {dimension_numbers = #tpu.dot_dimension_numbers<[1], [0], [0], [1], [0, 0, 1, 1], [], []>} : vector<16x20xbf16>, vector<20x128xbf16>, vector<16x128xf32> -> vector<16x128xf32>
    %98 = arith.truncf %97 : vector<16x128xf32> to vector<16x128xbf16>
    %c0_94 = arith.constant 0 : index
    %c384_95 = arith.constant 384 : index
    %99 = vector.load %arg14[%c0_94, %c384_95] : memref<16x512xbf16, #tpu.memory_space<vmem>>, vector<16x128xbf16>
    tpu.vector_store %arg14[%c0_94, %c384_95], %98 {strides = array<i32>} : memref<16x512xbf16, #tpu.memory_space<vmem>>, vector<16x128xbf16>,
    %c0_96 = arith.constant 0 : index
    %c0_97 = arith.constant 0 : index
    %100 = vector.load %arg14[%c0_96, %c0_97] : memref<16x512xbf16, #tpu.memory_space<vmem>>, vector<6x512xbf16>
    %c0_98 = arith.constant 0 : index
    %c0_99 = arith.constant 0 : index
    %c0_100 = arith.constant 0 : index
    %101 = vector.load %arg4[%c0_98, %c0_99, %c0_100] : memref<4x512x128xbf16, #tpu.memory_space<vmem>>, vector<1x512x128xbf16>
    %102 = vector.shape_cast %101 : vector<1x512x128xbf16> to vector<512x128xbf16>
    %cst_101 = arith.constant dense<0.000000e+00> : vector<6x128xf32>
    %103 = tpu.matmul %100, %102, %cst_101 {dimension_numbers = #tpu.dot_dimension_numbers<[1], [0], [0], [1], [0, 0, 1, 1], [], []>} : vector<6x512xbf16>, vector<512x128xbf16>, vector<6x128xf32> -> vector<6x128xf32>
    %c1_102 = arith.constant 1 : index
    %c0_103 = arith.constant 0 : index
    %104 = vector.load %arg14[%c1_102, %c0_103] : memref<16x512xbf16, #tpu.memory_space<vmem>>, vector<6x512xbf16>
    %c1_104 = arith.constant 1 : index
    %c0_105 = arith.constant 0 : index
    %c0_106 = arith.constant 0 : index
    %105 = vector.load %arg4[%c1_104, %c0_105, %c0_106] : memref<4x512x128xbf16, #tpu.memory_space<vmem>>, vector<1x512x128xbf16>
    %106 = vector.shape_cast %105 : vector<1x512x128xbf16> to vector<512x128xbf16>
    %cst_107 = arith.constant dense<0.000000e+00> : vector<6x128xf32>
    %107 = tpu.matmul %104, %106, %cst_107 {dimension_numbers = #tpu.dot_dimension_numbers<[1], [0], [0], [1], [0, 0, 1, 1], [], []>} : vector<6x512xbf16>, vector<512x128xbf16>, vector<6x128xf32> -> vector<6x128xf32>
    %108 = arith.addf %103, %107 : vector<6x128xf32>
    %c3_108 = arith.constant 3 : index
    %c0_109 = arith.constant 0 : index
    %109 = vector.load %arg14[%c3_108, %c0_109] : memref<16x512xbf16, #tpu.memory_space<vmem>>, vector<6x512xbf16>
    %c2_110 = arith.constant 2 : index
    %c0_111 = arith.constant 0 : index
    %c0_112 = arith.constant 0 : index
    %110 = vector.load %arg4[%c2_110, %c0_111, %c0_112] : memref<4x512x128xbf16, #tpu.memory_space<vmem>>, vector<1x512x128xbf16>
    %111 = vector.shape_cast %110 : vector<1x512x128xbf16> to vector<512x128xbf16>
    %cst_113 = arith.constant dense<0.000000e+00> : vector<6x128xf32>
    %112 = tpu.matmul %109, %111, %cst_113 {dimension_numbers = #tpu.dot_dimension_numbers<[1], [0], [0], [1], [0, 0, 1, 1], [], []>} : vector<6x512xbf16>, vector<512x128xbf16>, vector<6x128xf32> -> vector<6x128xf32>
    %113 = arith.addf %108, %112 : vector<6x128xf32>
    %c4 = arith.constant 4 : index
    %c0_114 = arith.constant 0 : index
    %114 = vector.load %arg14[%c4, %c0_114] : memref<16x512xbf16, #tpu.memory_space<vmem>>, vector<6x512xbf16>
    %c3_115 = arith.constant 3 : index
    %c0_116 = arith.constant 0 : index
    %c0_117 = arith.constant 0 : index
    %115 = vector.load %arg4[%c3_115, %c0_116, %c0_117] : memref<4x512x128xbf16, #tpu.memory_space<vmem>>, vector<1x512x128xbf16>
    %116 = vector.shape_cast %115 : vector<1x512x128xbf16> to vector<512x128xbf16>
    %cst_118 = arith.constant dense<0.000000e+00> : vector<6x128xf32>
    %117 = tpu.matmul %114, %116, %cst_118 {dimension_numbers = #tpu.dot_dimension_numbers<[1], [0], [0], [1], [0, 0, 1, 1], [], []>} : vector<6x512xbf16>, vector<512x128xbf16>, vector<6x128xf32> -> vector<6x128xf32>
    %118 = arith.addf %113, %117 : vector<6x128xf32>
    %c0_119 = arith.constant 0 : index
    %c0_120 = arith.constant 0 : index
    %119 = vector.load %arg7[%c0_119, %c0_120] : memref<1x128xf32, #tpu.memory_space<vmem>>, vector<1x128xf32>
    %120 = vector.broadcast %119 : vector<1x128xf32> to vector<6x128xf32>
    %121 = arith.addf %118, %120 : vector<6x128xf32>
    %cst_121 = arith.constant 0.000000e+00 : f32
    %122 = vector.broadcast %cst_121 : f32 to vector<6x128xf32>
    %123 = arith.cmpf oge, %121, %122 : vector<6x128xf32>
    %cst_122 = arith.constant 1.000000e-01 : f32
    %124 = vector.broadcast %cst_122 : f32 to vector<6x128xf32>
    %125 = arith.mulf %124, %121 : vector<6x128xf32>
    %126 = arith.select %123, %121, %125 : vector<6x128xi1>, vector<6x128xf32>
    %c0_123 = arith.constant 0 : index
    %c0_124 = arith.constant 0 : index
    %127 = vector.load %arg10[%c0_123, %c0_124] : memref<6x128xf32, #tpu.memory_space<vmem>>, vector<6x128xf32>
    %128 = arith.mulf %126, %127 : vector<6x128xf32>
    %cst_125 = arith.constant dense<0.000000e+00> : vector<128xf32>
    %129 = vector.multi_reduction <add>, %128, %cst_125 [0] : vector<6x128xf32> to vector<128xf32>
    %130 = vector.shape_cast %129 : vector<128xf32> to vector<1x128xf32>
    %cst_126 = arith.constant dense<0.000000e+00> : vector<1xf32>
    %131 = vector.multi_reduction <add>, %130, %cst_126 [1] : vector<1x128xf32> to vector<1xf32>
    %132 = vector.shape_cast %131 : vector<1xf32> to vector<1x1xf32>
    %c0_127 = arith.constant 0 : index
    %c0_128 = arith.constant 0 : index
    %133 = vector.load %arg11[%c0_127, %c0_128] : memref<1x1xf32, #tpu.memory_space<vmem>>, vector<1x1xf32>
    %134 = arith.addf %132, %133 : vector<1x1xf32>
    %c0_129 = arith.constant 0 : index
    %c0_130 = arith.constant 0 : index
    %c0_131 = arith.constant 0 : index
    %135 = vector.load %arg12[%c0_129, %c0_130, %c0_131] : memref<1x1x1xf32, #tpu.memory_space<vmem>>, vector<1x1x1xf32>
    %136 = vector.shape_cast %135 : vector<1x1x1xf32> to vector<1x1xf32>
    %137 = vector.shape_cast %134 : vector<1x1xf32> to vector<1x1x1xf32>
    tpu.vector_store %arg12[%c0_129, %c0_130, %c0_131], %137 {strides = array<i32>} : memref<1x1x1xf32, #tpu.memory_space<vmem>>, vector<1x1x1xf32>,
    return
  }
  func.func @transform_0(%arg0: i32) -> (i32, i32, i32) {
    %c0_i32 = arith.constant 0 : i32
    %c0_i32_0 = arith.constant 0 : i32
    %c0_i32_1 = arith.constant 0 : i32
    return %arg0, %c0_i32, %c0_i32_0 : i32, i32, i32
  }
  func.func @transform_1(%arg0: i32) -> (i32, i32, i32) {
    %c0_i32 = arith.constant 0 : i32
    %c0_i32_0 = arith.constant 0 : i32
    %c0_i32_1 = arith.constant 0 : i32
    %c0_i32_2 = arith.constant 0 : i32
    return %c0_i32, %c0_i32_0, %c0_i32_1 : i32, i32, i32
  }
  func.func @transform_2(%arg0: i32) -> (i32, i32, i32) {
    %c0_i32 = arith.constant 0 : i32
    %c0_i32_0 = arith.constant 0 : i32
    %c0_i32_1 = arith.constant 0 : i32
    %c0_i32_2 = arith.constant 0 : i32
    return %c0_i32, %c0_i32_0, %c0_i32_1 : i32, i32, i32
  }
  func.func @transform_3(%arg0: i32) -> (i32, i32, i32) {
    %c0_i32 = arith.constant 0 : i32
    %c0_i32_0 = arith.constant 0 : i32
    %c0_i32_1 = arith.constant 0 : i32
    %c0_i32_2 = arith.constant 0 : i32
    return %c0_i32, %c0_i32_0, %c0_i32_1 : i32, i32, i32
  }
  func.func @transform_4(%arg0: i32) -> (i32, i32) {
    %c0_i32 = arith.constant 0 : i32
    %c0_i32_0 = arith.constant 0 : i32
    %c0_i32_1 = arith.constant 0 : i32
    return %c0_i32, %c0_i32_0 : i32, i32
  }
  func.func @transform_5(%arg0: i32) -> (i32, i32) {
    %c0_i32 = arith.constant 0 : i32
    %c0_i32_0 = arith.constant 0 : i32
    %c0_i32_1 = arith.constant 0 : i32
    return %c0_i32, %c0_i32_0 : i32, i32
  }
  func.func @transform_6(%arg0: i32) -> (i32, i32) {
    %c0_i32 = arith.constant 0 : i32
    %c0_i32_0 = arith.constant 0 : i32
    %c0_i32_1 = arith.constant 0 : i32
    return %c0_i32, %c0_i32_0 : i32, i32
  }
  func.func @transform_7(%arg0: i32) -> (i32, i32, i32) {
    %c0_i32 = arith.constant 0 : i32
    %c0_i32_0 = arith.constant 0 : i32
    %c0_i32_1 = arith.constant 0 : i32
    %c0_i32_2 = arith.constant 0 : i32
    return %c0_i32, %c0_i32_0, %c0_i32_1 : i32, i32, i32
  }
  func.func @transform_8(%arg0: i32) -> (i32, i32, i32) {
    %c0_i32 = arith.constant 0 : i32
    %c0_i32_0 = arith.constant 0 : i32
    %c0_i32_1 = arith.constant 0 : i32
    %c0_i32_2 = arith.constant 0 : i32
    return %c0_i32, %c0_i32_0, %c0_i32_1 : i32, i32, i32
  }
  func.func @transform_9(%arg0: i32) -> (i32, i32) {
    %c0_i32 = arith.constant 0 : i32
    %c0_i32_0 = arith.constant 0 : i32
    %c0_i32_1 = arith.constant 0 : i32
    return %c0_i32, %c0_i32_0 : i32, i32
  }
  func.func @transform_10(%arg0: i32) -> (i32, i32) {
    %c0_i32 = arith.constant 0 : i32
    %c0_i32_0 = arith.constant 0 : i32
    %c0_i32_1 = arith.constant 0 : i32
    return %c0_i32, %c0_i32_0 : i32, i32
  }
  func.func @transform_11(%arg0: i32) -> (i32, i32, i32) {
    %c0_i32 = arith.constant 0 : i32
    %c0_i32_0 = arith.constant 0 : i32
    %c0_i32_1 = arith.constant 0 : i32
    return %arg0, %c0_i32, %c0_i32_0 : i32, i32, i32
  }
}

</mosaic_0001>

<bundles_post_ra>
// kernel: cdim_forward.2
= control target key start
LH: loop header
LB: loop body
LE: loop exit
PB: predicated region body
PF: predicated region fallthrough
CT: control target
= control target key end

     0   :  { %vm32_vm0 = vcmask 1043456   ;;  %vm28_vm1 = vcmask 64512   ;;  %vm74_vm4 = vcmask 1040384   ;;  %s118_s1 = inlined_call_operand.vmem [shape: bf16[8,256], index: 1, kind: input, shape index: {}]   ;;  %s119_s0 = inlined_call_operand.vmem [shape: bf16[2,8], index: 0, kind: input, shape index: {}]   ;;  %s120_s2 = inlined_call_operand.vmem [shape: f32[1,256], index: 2, kind: input, shape index: {}]   ;;  %s121_s3 = inlined_call_operand.vmem [shape: bf16[2,256], index: 3, kind: output, shape index: {}]  }
   0x1   :  { %v16_v0 = vld [vmem:[%s118_s1] sm:$0xff] }
   0x2   :  { %v24_v1 = vunpack.c.l.b16 %v16_v0  ;;  %v25_v2 = vunpack.c.h.b16 %v16_v0  ;;  %v15_v7 = vld [vmem:[%s119_s0] sm:$0x1] }
   0x3   :  { %v17_v8 = vld [vmem:[%s120_s2] sm:$0x3] }
   0x4   :  { %v26_v3 = vpack.c.b16 %v24_v1, %v24_v1  ;;  %v27_v4 = vpack.c.b16 %v25_v2, %v25_v2  ;;  %v19_v9 = vperm.slane %v17_v8, 0  ;;  %v20_v10 = vperm.slane %v17_v8, 1 }
   0x6   :  { %v34_v5 = vsel %vm32_vm0, %v26_v3, 0  ;;  %v37_v6 = vsel %vm32_vm0, %v27_v4, 0 }
   0x7   :  { %46 = vmatpush.bf16.msra.mxu0 %v34_v5  ;;  %59 = vmatpush.bf16.msra.mxu1 %v37_v6 }
   0xa   :  { %84 = vmatmul.msk.bf16.vlgmr.msra.gmra.mxu0 %vm28_vm1, %v15_v7  ;;  %85 = vmatmul.msk.bf16.vlgmr.msra.gmra.mxu1 %vm28_vm1, %v15_v7 }
  0x87   :  { %v48_v11 = vpop.f32.mrf.mxu0  ;;  %v61_v12 = vpop.f32.mrf.mxu1 }
  0x88   :  { %v49_v13 = vadd.f32 %v48_v11, %v19_v9  ;;  %v62_v14 = vadd.f32 %v61_v12, %v20_v10 }
  0x8a   :  { %vm65_vm2 = vcmp.ge.f32.partialorder %v49_v13, 0.0  ;;  %v67_v15 = vmul.f32 0.1, %v49_v13  ;;  %vm66_vm3 = vcmp.ge.f32.partialorder %v62_v14, 0.0  ;;  %v68_v16 = vmul.f32 0.1, %v62_v14 }
  0x8c   :  { %v69_v17 = vsel %vm65_vm2, %v49_v13, %v67_v15  ;;  %v70_v18 = vsel %vm66_vm3, %v62_v14, %v68_v16 }
  0x8d   :  { %v71_v19 = vpack.c.bf16 %v70_v18, %v69_v17 }
  0x8f   :  { %v73_v20 = vrot.slane %v71_v19, 3  ;;  %v50_v21 = vpop.f32.mrf.mxu0  ;;  %v63_v22 = vpop.f32.mrf.mxu1 }
  0x91   :  { %v77_v23 = vsel %vm74_vm4, %v71_v19, %v73_v20 }
  0x92   :  { %79 = vst [vmem:[%s121_s3] sm:$0x3] %v77_v23 }

// kernel: cdim_forward.3
= control target key start
LH: loop header
LB: loop body
LE: loop exit
PB: predicated region body
PF: predicated region fallthrough
CT: control target
= control target key end

     0   :  { %s7677_s0 = inlined_call_operand.vmem [shape: bf16[2,88,128], index: 0, kind: input, shape index: {}]   ;;  %s7678_s1 = inlined_call_operand.vmem [shape: bf16[4,128,128], index: 1, kind: input, shape index: {}]   ;;  %s7679_s2 = inlined_call_operand.vmem [shape: bf16[4,512,128], index: 2, kind: input, shape index: {}]   ;;  %s7680_s3 = inlined_call_operand.vmem [shape: bf16[4,512,128], index: 3, kind: input, shape index: {}]   ;;  %s7681_s4 = inlined_call_operand.vmem [shape: f32[1,128], index: 4, kind: input, shape index: {}, may-alias: {4,5,6}]   ;;  %s7682_s5 = inlined_call_operand.vmem [shape: f32[1,128], index: 5, kind: input, shape index: {}, may-alias: {4,5,6}]   ;;  %s7683_s6 = inlined_call_operand.vmem [shape: f32[1,128], index: 6, kind: input, shape index: {}, may-alias: {4,5,6}]   ;;  %s7684_s7 = inlined_call_operand.hbm [shape: bf16[4,32,72], index: 7, kind: input, shape index: {}]   ;;  %s7685_s8 = inlined_call_operand.vmem [shape: bf16[4,16,20], index: 8, kind: input, shape index: {}]   ;;  %s7686_s9 = inlined_call_operand.vmem [shape: f32[6,128], index: 9, kind: input, shape index: {}]   ;;  %s7687_s10 = inlined_call_operand.<no memory space> [shape: f32[1,1], index: 10, kind: input, shape index: {}]   ;;  %s7688_s11 = inlined_call_operand.vmem [shape: f32[2,1,1], index: 11, kind: output, shape index: {}]  }
   0x1   :  { %v16_v0 = vstv %s7687_s10 }
   0x2   :  { %17 = vst [vmem:[#allocation4] sm:$0x1] %v16_v0 }
   0x3   :  { %18 = vsyncpa [#allocation6], 0  ;;  %s6598_s19 = smov 0  }
   0x4 LB: > { %s320_s22 = sshll.u32 %s7684_s7, 4  ;;  %s4422_s23 = sadd.s32 4294967295, %s6530_s19   ;;  %s6530_s19 = sphi %s6598_s19, %s24_s19   ;;  %s321_s22 = int_to_ptr.hbm [resolvable:$true] %s320_s22 }
   0x5   : > { %p4424_p0 = scmp.ge.s32.totalorder %s6530_s19, 1  ;;  %p291_p1 = scmp.lt.s32.totalorder %s6530_s19, 3 }
   0x6   : > { %p6471_p2 = scmp.eq.s32.totalorder %s4422_s23, 0  ;;  %s6532_s10 = smov [#allocation5]  }
   0x7   : > { %p292_p3 = pnand %p4424_p0, %p291_p1  ;;  %s322_s24 = sshll.u32 %s6532_s10, 4  ;;  %s323_s24 = int_to_ptr.vmem [resolvable:$true] %s322_s24 }
   0x8   : > { %s6533_s25 = smov 64   ;;  %s6534_s26 = smov 4  }
   0x9   : > { %p6467_p4 = pneg %p292_p3  ;;  %355 = sbr.rel (%p292_p3) target bundleno = 1206 (0x4b6), region = 64 }
   0xb   : > { %p6468_p5 = pnand %p6471_p2, %p6467_p4 }
   0xd   : > { %6470 = dma.hbm_to_vmem [thread:$0]  (!%p6468_p5), %s321_s22, 1024, %s323_s24, [#allocation6], %s6533_s25, %s6533_s25, %s6534_s26  }
   0xe   : > { %6525 = dma.done.wait (%p6471_p2), [#allocation6], 1024  }
   0xf   : > { %6527 = vsyncadd (%p6471_p2), [#allocation6], 4294966272  ;;  %p394_p6 = scmp.lt.s32.totalorder %s4422_s23, 1  ;;  %v6165_v1 = vld [vmem:[%s7678_s1 + $0x78] sm:$0xff]  ;;  %v6164_v5 = vld [vmem:[%s7678_s1 + $0x70] sm:$0xff]  ;;  %vm891_vm1 = vcmask 1046528  }
  0x10   : > { %v6157_v2 = vld [vmem:[%s7678_s1 + $0x38] sm:$0xff]  ;;  %564 = vmatpush.bf16.msra.mxu0 %v6165_v1  ;;  %v6156_v6 = vld [vmem:[%s7678_s1 + $0x30] sm:$0xff]  ;;  %v6163_v9 = vld [vmem:[%s7678_s1 + $0x68] sm:$0xff]  ;;  %vm471_vm0 = vsmask.f32 7424  ;;  %vm1062_vm4 = vcmask 1043456  }
  0x11   : > { %v6177_v3 = vld [vmem:[%s7678_s1 + $0xb8] sm:$0xff]  ;;  %s7690_s23 = smov (!%p394_p6, %s4422_s23), 1  ;;  %651 = vmatpush.bf16.msra.mxu1 %v6157_v2  ;;  %v6176_v7 = vld [vmem:[%s7678_s1 + $0xb0] sm:$0xff]  ;;  %v6155_v10 = vld [vmem:[%s7678_s1 + $0x28] sm:$0xff]  ;;  %vm1055_vm12 = vcmask 588800   ;;  %vm2540_vm14 = vcmask 1044480  }
  0x12   : > { %v6185_v4 = vld [vmem:[%s7678_s1 + $0xf8] sm:$0xff]  ;;  %828 = vmatpush.bf16.msra.mxu2 %v6177_v3  ;;  %v6184_v8 = vld [vmem:[%s7678_s1 + $0xf0] sm:$0xff]  ;;  %s6462_s25 = smul.u32 44, %s7690_s23  ;;  %v6175_v11 = vld [vmem:[%s7678_s1 + $0xa8] sm:$0xff]  ;;  %vm2119_vm13 = vsmask.f32 5376  ;;  %s401_s13 = scalar_lea.vmem %s7688_s11, %s7690_s23 }
  0x13   : > { %954 = vmatpush.bf16.msra.mxu3 %v6185_v4  ;;  %v6183_v12 = vld [vmem:[%s7678_s1 + $0xe8] sm:$0xff]  ;;  %v6162_v13 = vld [vmem:[%s7678_s1 + $0x60] sm:$0xff]  ;;  %v6161_v19 = vld [vmem:[%s7678_s1 + $0x58] sm:$0xff] }
  0x14   : > { %565 = vmatpush.bf16.msra.mxu0 %v6164_v5  ;;  %s6651_s17 = scalar_lea.vmem %s7677_s0, %s6462_s25  ;;  %v6154_v14 = vld [vmem:[%s7678_s1 + $0x20] sm:$0xff]  ;;  %v6153_v20 = vld [vmem:[%s7678_s1 + $0x18] sm:$0xff]  ;;  %v6160_v25 = vld [vmem:[%s7678_s1 + $0x50] sm:$0xff] }
  0x15   : > { %652 = vmatpush.bf16.msra.mxu1 %v6156_v6  ;;  %v6174_v15 = vld [vmem:[%s7678_s1 + $0xa0] sm:$0xff]  ;;  %v6487_v18 = vld [vmem:[%s6651_s17 + $0x4] sm:$0xf0]  ;;  %v6173_v22 = vld [vmem:[%s7678_s1 + $0x98] sm:$0xff] }
  0x16   : > { %829 = vmatpush.bf16.msra.mxu2 %v6176_v7  ;;  %v6182_v16 = vld [vmem:[%s7678_s1 + $0xe0] sm:$0xff]  ;;  %v6181_v23 = vld [vmem:[%s7678_s1 + $0xd8] sm:$0xff]  ;;  %v6152_v26 = vld [vmem:[%s7678_s1 + $0x10] sm:$0xff] }
  0x17   : > { %955 = vmatpush.bf16.msra.mxu3 %v6184_v8  ;;  %v684_v17 = vld [vmem:[%s6651_s17 + $0x4] sm:$0xff]   ;;  %v6172_v29 = vld [vmem:[%s7678_s1 + $0x90] sm:$0xff]  ;;  %v6149_v7 = vld [vmem:[%s6651_s17 + $0x18] sm:$0xff] }
  0x18   : > { %566 = vmatpush.bf16.msra.mxu0 %v6163_v9  ;;  %v6146_v21 = vld [vmem:[%s6651_s17] sm:$0xff]  ;;  %v6688_v27 = vld [vmem:[%s6651_s17 + $0x8] sm:$0xff]  ;;  %v6180_v30 = vld [vmem:[%s7678_s1 + $0xd0] sm:$0xff]  ;;  %v739_v32 = vshll.u32 %v684_v17, 16  ;;  %v737_v40 = vshrl.u32 %v684_v17, 16 }
  0x19   : > { %653 = vmatpush.bf16.msra.mxu1 %v6155_v10  ;;  %v6488_v24 = vld [vmem:[%s6651_s17 + $0x4] sm:$0xe]  ;;  %v475_v28 = vshll.u32 %v6146_v21, 16  ;;  %v6166_v31 = vld [vmem:[%s6651_s17 + $0xc] sm:$0xff]  ;;  %v473_v35 = vshrl.u32 %v6146_v21, 16  ;;  %v480_v37 = vshll.u32 %v6688_v27, 16 }
  0x1a   : > { %830 = vmatpush.bf16.msra.mxu2 %v6175_v11  ;;  %v6159_v33 = vld [vmem:[%s7678_s1 + $0x48] sm:$0xff]  ;;  %v741_v41 = vrot.slane %v739_v32, 1  ;;  %v744_v42 = vshll.u32 %v6166_v31, 16  ;;  %v6489_v43 = vor.u32 %v6488_v24, %v6487_v18  ;;  %v6158_v44 = vld [vmem:[%s7678_s1 + $0x40] sm:$0xff]  ;;  %v893_v53 = vrot.slane %v6166_v31, 1  ;;  %v6148_v57 = vld [vmem:[%s6651_s17 + $0x10] sm:$0xff] }
  0x1b   : > { %956 = vmatpush.bf16.msra.mxu3 %v6183_v12  ;;  %v6151_v34 = vld [vmem:[%s7678_s1 + $0x8] sm:$0xff]  ;;  %v477_v36 = vrot.slane %v475_v28, 1  ;;  %v6150_v45 = vld [vmem:[%s7678_s1] sm:$0xff]  ;;  %v482_v47 = vrot.slane %v480_v37, 1  ;;  %v6167_v58 = vld [vmem:[%s6651_s17 + $0x14] sm:$0xff]  ;;  %v484_v59 = vshrl.u32 %v6688_v27, 16 }
  0x1c   : > { %567 = vmatpush.bf16.msra.mxu0 %v6162_v13  ;;  %v6171_v38 = vld [vmem:[%s7678_s1 + $0x88] sm:$0xff]  ;;  %v6170_v48 = vld [vmem:[%s7678_s1 + $0x80] sm:$0xff]  ;;  %v742_v50 = vor.u32 %v741_v41, %v737_v40  ;;  %v746_v51 = vrot.slane %v744_v42, 1  ;;  %v892_v52 = vrot.slane %v6489_v43, 1  ;;  %v488_v60 = vshll.u32 %v6148_v57, 16 }
  0x1d   : > { %654 = vmatpush.bf16.msra.mxu1 %v6154_v14  ;;  %v6179_v39 = vld [vmem:[%s7678_s1 + $0xc8] sm:$0xff]  ;;  %v478_v46 = vor.u32 %v477_v36, %v473_v35  ;;  %v6178_v49 = vld [vmem:[%s7678_s1 + $0xc0] sm:$0xff]  ;;  %v748_v61 = vshrl.u32 %v6166_v31, 16  ;;  %v752_v62 = vshll.u32 %v6167_v58, 16  ;;  %v486_v63 = vor.u32 %v484_v59, %v482_v47 }
  0x1e   : > { %831 = vmatpush.bf16.msra.mxu2 %v6174_v15  ;;  %v747_v55 = vsel %vm471_vm0, %v742_v50, %v746_v51  ;;  %v894_v56 = vsel %vm891_vm1, %v892_v52, %v893_v53  ;;  %v490_v0 = vrot.slane %v488_v60, 1  ;;  %v895_v3 = vrot.slane %v6167_v58, 1  ;;  %v6168_v8 = vld [vmem:[%s6651_s17 + $0x1c] sm:$0xff] }
  0x1f   : > { %957 = vmatpush.bf16.msra.mxu3 %v6182_v16  ;;  %v483_v54 = vsel %vm471_vm0, %v478_v46, %v482_v47  ;;  %v750_v1 = vor.u32 %v748_v61, %v746_v51  ;;  %v754_v2 = vrot.slane %v752_v62, 1  ;;  %v492_v9 = vshrl.u32 %v6148_v57, 16  ;;  %v411_v18 = vld [vmem:[%s6651_s17 + $0x20] sm:$0xf] }
  0x20   : > { %568 = vmatpush.bf16.msra.mxu0 %v6161_v19  ;;  %v491_v4 = vsel %vm471_vm0, %v486_v63, %v490_v0  ;;  %v896_v6 = vsel %vm891_vm1, %v893_v53, %v895_v3  ;;  %v496_v10 = vshll.u32 %v6149_v7, 16  ;;  %v756_v11 = vshrl.u32 %v6167_v58, 16  ;;  %v428_v19 = vld [vmem:[%s6651_s17 + $0x24] sm:$0x1] }
  0x21   : > { %655 = vmatpush.bf16.msra.mxu1 %v6153_v20  ;;  %v755_v5 = vsel %vm471_vm0, %v750_v1, %v754_v2  ;;  %v760_v12 = vshll.u32 %v6168_v8, 16  ;;  %v494_v13 = vor.u32 %v492_v9, %v490_v0  ;;  %v897_v17 = vrot.slane %v6168_v8, 1 }
  0x22   : > { %832 = vmatpush.bf16.msra.mxu2 %v6173_v22  ;;  %v498_v14 = vrot.slane %v496_v10, 1  ;;  %v758_v15 = vor.u32 %v756_v11, %v754_v2  ;;  %v465_v22 = vunpack.c.l.b16 %v428_v19  ;;  %v764_v31 = vshrl.u32 %v6168_v8, 16 }
  0x23   : > { %958 = vmatpush.bf16.msra.mxu3 %v6181_v23  ;;  %v762_v16 = vrot.slane %v760_v12, 1  ;;  %v898_v24 = vsel %vm891_vm1, %v895_v3, %v897_v17 }
  0x24   : > { %569 = vmatpush.bf16.msra.mxu0 %v6160_v25  ;;  %v499_v20 = vsel %vm471_vm0, %v494_v13, %v498_v14  ;;  %v4556_v25 = vld [vmem:[%s6651_s17 + $0x24] sm:$0xf] }
  0x25   : > { %656 = vmatpush.bf16.msra.mxu1 %v6152_v26  ;;  %v763_v23 = vsel %vm471_vm0, %v758_v15, %v762_v16  ;;  %v6169_v26 = vld [vmem:[%s6651_s17 + $0x24] sm:$0x10]  ;;  %v766_v35 = vor.u32 %v764_v31, %v762_v16 }
  0x26   : > { %833 = vmatpush.bf16.msra.mxu2 %v6172_v29  ;;  %v4557_v28 = vor.u32 %v6169_v26, %v4556_v25  ;;  %v500_v29 = vshrl.u32 %v6149_v7, 16 }
  0x27   : > { %959 = vmatpush.bf16.msra.mxu3 %v6180_v30 }
  0x28   : > { %570 = vmatpush.bf16.msra.mxu0 %v6159_v33  ;;  %v768_v32 = vshll.u32 %v4557_v28, 16  ;;  %v502_v33 = vor.u32 %v500_v29, %v498_v14  ;;  %v899_v37 = vrot.slane %v4557_v28, 1  ;;  %v772_v42 = vshrl.u32 %v4557_v28, 16 }
  0x29   : > { %657 = vmatpush.bf16.msra.mxu1 %v6151_v34 }
  0x2a   : > { %834 = vmatpush.bf16.msra.mxu2 %v6171_v38  ;;  %v770_v36 = vrot.slane %v768_v32, 1  ;;  %v900_v40 = vsel %vm891_vm1, %v897_v17, %v899_v37 }
  0x2b   : > { %960 = vmatpush.bf16.msra.mxu3 %v6179_v39 }
  0x2c   : > { %571 = vmatpush.bf16.msra.mxu0 %v6158_v44  ;;  %v771_v39 = vsel %vm471_vm0, %v766_v35, %v770_v36 }
  0x2d   : > { %658 = vmatpush.bf16.msra.mxu1 %v6150_v45  ;;  %v774_v45 = vor.u32 %v772_v42, %v770_v36 }
  0x2e   : > { %835 = vmatpush.bf16.msra.mxu2 %v6170_v48 }
  0x2f   : > { %961 = vmatpush.bf16.msra.mxu3 %v6178_v49  ;;  %572 = vmatmul.bf16.vlgmr.msra.gmra.mxu0 %v483_v54 }
  0x30   : > { %659 = vmatmul.bf16.vlgmr.msra.gmra.mxu1 %v6146_v21  ;;  %v464_v21 = vunpack.c.l.b16 %v411_v18 }
  0x31   : > { %836 = vmatmul.bf16.vlgmr.msra.gmra.mxu2 %v747_v55 }
  0x32   : > { %962 = vmatmul.bf16.vlgmr.msra.gmra.mxu3 %v894_v56  ;;  %v597_v44 = vpack.c.b16 %v464_v21, %v464_v21 }
  0x3f   : > { %577 = vmatmul.bf16.gmra.mxu0 %v491_v4 }
  0x40   : > { %664 = vmatmul.bf16.gmra.mxu1 %v6688_v27  ;;  %v470_v27 = vpack.c.b16 %v465_v22, %v464_v21 }
  0x41   : > { %841 = vmatmul.bf16.gmra.mxu2 %v755_v5 }
  0x42   : > { %967 = vmatmul.bf16.gmra.mxu3 %v896_v6  ;;  %v504_v30 = vshll.u32 %v470_v27, 16  ;;  %v508_v41 = vshrl.u32 %v470_v27, 16 }
  0x44   : > { %v506_v34 = vrot.slane %v504_v30, 1 }
  0x46   : > { %v507_v38 = vsel %vm471_vm0, %v502_v33, %v506_v34  ;;  %v510_v43 = vor.u32 %v508_v41, %v506_v34  ;;  %v6484_v34 = vld [vmem:[%s7681_s4] ss:$0 sm:$0xff] }
  0x4f   : > { %582 = vmatmul.bf16.gmra.mxu0 %v499_v20 }
  0x50   : > { %669 = vmatmul.bf16.gmra.mxu1 %v6148_v57 }
  0x51   : > { %846 = vmatmul.bf16.gmra.mxu2 %v763_v23 }
  0x52   : > { %972 = vmatmul.bf16.gmra.mxu3 %v898_v24 }
  0x5f   : > { %587 = vmatmul.bf16.gmra.mxu0 %v507_v38 }
  0x60   : > { %674 = vmatmul.bf16.gmra.mxu1 %v6149_v7 }
  0x61   : > { %851 = vmatmul.bf16.gmra.mxu2 %v771_v39 }
  0x62   : > { %977 = vmatmul.bf16.gmra.mxu3 %v900_v40 }
  0x6f   : > { %592 = vmatmul.bf16.gmra.mxu0 %v510_v43 }
  0x70   : > { %679 = vmatmul.bf16.gmra.mxu1 %v597_v44 }
  0x71   : > { %856 = vmatmul.bf16.gmra.mxu2 %v774_v45 }
  0x72   : > { %982 = vmatmul.bf16.gmra.mxu3 %v899_v37 }
  0xac   : > { %v573_v46 = vpop.f32.mrf.mxu0 }
  0xad   : > { %v660_v47 = vpop.f32.mrf.mxu1 }
  0xae   : > { %v661_v48 = vadd.f32 %v660_v47, %v573_v46 }
  0xb4   : > { %v837_v49 = vpop.f32.mrf.mxu2  ;;  %v575_v52 = vpop.f32.mrf.mxu0 }
  0xb5   : > { %v963_v50 = vpop.f32.mrf.mxu3  ;;  %v861_v51 = vadd.f32 %v837_v49, %v661_v48  ;;  %v662_v53 = vpop.f32.mrf.mxu1 }
  0xb6   : > { %v663_v42 = vadd.f32 %v662_v53, %v575_v52 }
  0xb7   : > { %v6744_v54 = vadd.f32 %v963_v50, %v861_v51 }
  0xbc   : > { %v839_v55 = vpop.f32.mrf.mxu2  ;;  %v578_v57 = vpop.f32.mrf.mxu0 }
  0xbd   : > { %v6746_v56 = vpop.f32.mrf.mxu3  ;;  %v665_v58 = vpop.f32.mrf.mxu1  ;;  %v862_v47 = vadd.f32 %v839_v55, %v663_v42  ;;  %v6241_v42 = vld [vmem:[%s7679_s2 + $0x158] sm:$0xff] }
  0xbe   : > { %v666_v59 = vadd.f32 %v665_v58, %v578_v57 }
  0xbf   : > { %v988_v52 = vadd.f32 %v6746_v56, %v862_v47  ;;  %v1000_v56 = vadd.f32 %v6484_v34, %v6744_v54  ;;  %v6249_v47 = vld [vmem:[%s7679_s2 + $0x198] sm:$0xff] }
  0xc1   : > { %vm1009_vm11 = vcmp.ge.f32.partialorder %v1000_v56, 0.0 }
  0xc4   : > { %v842_v60 = vpop.f32.mrf.mxu2  ;;  %v580_v62 = vpop.f32.mrf.mxu0 }
  0xc5   : > { %v968_v61 = vpop.f32.mrf.mxu3  ;;  %v667_v63 = vpop.f32.mrf.mxu1  ;;  %v863_v44 = vadd.f32 %v842_v60, %v666_v59 }
  0xc6   : > { %v668_v35 = vadd.f32 %v667_v63, %v580_v62 }
  0xc7   : > { %v989_v63 = vadd.f32 %v968_v61, %v863_v44  ;;  %v6258_v44 = vld [vmem:[%s7679_s2 + $0x1e0] sm:$0xff] }
  0xcc   : > { %v844_v0 = vpop.f32.mrf.mxu2  ;;  %v583_v2 = vpop.f32.mrf.mxu0 }
  0xcd   : > { %v970_v1 = vpop.f32.mrf.mxu3  ;;  %v670_v3 = vpop.f32.mrf.mxu1  ;;  %v864_v39 = vadd.f32 %v844_v0, %v668_v35  ;;  %v6252_v35 = vld [vmem:[%s7679_s2 + $0x1b0] sm:$0xff] }
  0xce   : > { %v671_v24 = vadd.f32 %v670_v3, %v583_v2 }
  0xcf   : > { %v990_v49 = vadd.f32 %v970_v1, %v864_v39  ;;  %v1002_v1 = vadd.f32 %v6484_v34, %v989_v63  ;;  %v6251_v39 = vld [vmem:[%s7679_s2 + $0x1a8] sm:$0xff] }
  0xd1   : > { %v1003_v53 = vadd.f32 %v6484_v34, %v990_v49  ;;  %vm1011_vm9 = vcmp.ge.f32.partialorder %v1002_v1, 0.0  ;;  %v6231_v49 = vld [vmem:[%s7679_s2 + $0x108] sm:$0xff] }
  0xd3   : > { %vm1012_vm8 = vcmp.ge.f32.partialorder %v1003_v53, 0.0 }
  0xd4   : > { %v847_v4 = vpop.f32.mrf.mxu2  ;;  %v585_v6 = vpop.f32.mrf.mxu0 }
  0xd5   : > { %v973_v5 = vpop.f32.mrf.mxu3  ;;  %v672_v7 = vpop.f32.mrf.mxu1  ;;  %v865_v36 = vadd.f32 %v847_v4, %v671_v24  ;;  %v6189_v24 = vld [vmem:[#allocation5 + $0x18] sm:$0xff] }
  0xd6   : > { %v673_v25 = vadd.f32 %v672_v7, %v585_v6  ;;  %v1001_v6 = vadd.f32 %v6484_v34, %v988_v52  ;;  %v1021_v7 = vmul.f32 0.1, %v1003_v53  ;;  %v6247_v52 = vld [vmem:[%s7679_s2 + $0x188] sm:$0xff] }
  0xd7   : > { %v991_v45 = vadd.f32 %v973_v5, %v865_v36  ;;  %v6260_v36 = vld [vmem:[%s7679_s2 + $0x1f0] sm:$0xff] }
  0xd8   : > { %vm1010_vm10 = vcmp.ge.f32.partialorder %v1001_v6, 0.0 }
  0xd9   : > { %v1004_v0 = vadd.f32 %v6484_v34, %v991_v45  ;;  %v6232_v45 = vld [vmem:[%s7679_s2 + $0x110] sm:$0xff] }
  0xdb   : > { %v1022_v4 = vmul.f32 0.1, %v1004_v0  ;;  %vm1013_vm7 = vcmp.ge.f32.partialorder %v1004_v0, 0.0 }
  0xdc   : > { %v849_v8 = vpop.f32.mrf.mxu2  ;;  %v588_v10 = vpop.f32.mrf.mxu0 }
  0xdd   : > { %v975_v9 = vpop.f32.mrf.mxu3  ;;  %v675_v11 = vpop.f32.mrf.mxu1  ;;  %v866_v27 = vadd.f32 %v849_v8, %v673_v25  ;;  %v6191_v25 = vld [vmem:[#allocation5 + $0x28] sm:$0xff] }
  0xde   : > { %v676_v20 = vadd.f32 %v675_v11, %v588_v10  ;;  %v1031_v10 = vsel %vm1013_vm7, %v1004_v0, %v1022_v4 }
  0xdf   : > { %v992_v40 = vadd.f32 %v975_v9, %v866_v27  ;;  %v1020_v9 = vmul.f32 0.1, %v1002_v1  ;;  %v6237_v27 = vld [vmem:[%s7679_s2 + $0x138] sm:$0xff] }
  0xe1   : > { %v1005_v50 = vadd.f32 %v6484_v34, %v992_v40  ;;  %v6259_v40 = vld [vmem:[%s7679_s2 + $0x1e8] sm:$0xff] }
  0xe3   : > { %v1023_v59 = vmul.f32 0.1, %v1005_v50  ;;  %vm1014_vm6 = vcmp.ge.f32.partialorder %v1005_v50, 0.0 }
  0xe4   : > { %v852_v12 = vpop.f32.mrf.mxu2  ;;  %v590_v14 = vpop.f32.mrf.mxu0 }
  0xe5   : > { %v978_v13 = vpop.f32.mrf.mxu3  ;;  %v677_v15 = vpop.f32.mrf.mxu1  ;;  %v867_v26 = vadd.f32 %v852_v12, %v676_v20  ;;  %v1032_v8 = vsel %vm1014_vm6, %v1005_v50, %v1023_v59  ;;  %v1019_v12 = vmul.f32 0.1, %v1001_v6  ;;  %v6188_v20 = vld [vmem:[#allocation5 + $0x10] sm:$0xff]  ;;  %v6239_v50 = vld [vmem:[%s7679_s2 + $0x148] sm:$0xff]  ;;  %vm4361_vm6 = vcmask 0  }
  0xe6   : > { %v678_v21 = vadd.f32 %v677_v15, %v590_v14  ;;  %v1038_v11 = vpack.c.bf16 %v1032_v8, %v1031_v10  ;;  %v1018_v14 = vmul.f32 0.1, %v1000_v56  ;;  %v1029_v15 = vsel %vm1011_vm9, %v1002_v1, %v1020_v9  ;;  %v6205_v59 = vld [vmem:[%s7679_s2 + $0x38] sm:$0xff]  ;;  %v6254_v1 = vld [vmem:[%s7679_s2 + $0x1c0] sm:$0xff] }
  0xe7   : > { %v993_v37 = vadd.f32 %v978_v13, %v867_v26  ;;  %v1030_v13 = vsel %vm1012_vm8, %v1003_v53, %v1021_v7  ;;  %v6193_v26 = vld [vmem:[#allocation5 + $0x38] sm:$0xff]  ;;  %v6255_v53 = vld [vmem:[%s7679_s2 + $0x1c8] sm:$0xff] }
  0xe8   : > { %v1027_v54 = vsel %vm1009_vm11, %v1000_v56, %v1018_v14  ;;  %v6203_v14 = vld [vmem:[%s7679_s2 + $0x28] sm:$0xff] }
  0xe9   : > { %v1006_v46 = vadd.f32 %v6484_v34, %v993_v37  ;;  %v6234_v37 = vld [vmem:[%s7679_s2 + $0x120] sm:$0xff] }
  0xeb   : > { %v1024_v2 = vmul.f32 0.1, %v1006_v46  ;;  %vm1015_vm5 = vcmp.ge.f32.partialorder %v1006_v46, 0.0 }
  0xec   : > { %v854_v16 = vpop.f32.mrf.mxu2  ;;  %v593_v18 = vpop.f32.mrf.mxu0 }
  0xed   : > { %v980_v17 = vpop.f32.mrf.mxu3  ;;  %v680_v19 = vpop.f32.mrf.mxu1  ;;  %v868_v22 = vadd.f32 %v854_v16, %v678_v21  ;;  %v1033_v5 = vsel %vm1015_vm5, %v1006_v46, %v1024_v2  ;;  %v1037_v16 = vpack.c.bf16 %v1030_v13, %v1029_v15  ;;  %v6190_v21 = vld [vmem:[#allocation5 + $0x20] sm:$0xff]  ;;  %v6240_v46 = vld [vmem:[%s7679_s2 + $0x150] sm:$0xff]  ;;  %v6229_v13 = vld [vmem:[%s7679_s2 + $0xf8] sm:$0xff]  ;;  %vm4349_vm5 = vcmask 1045504  }
  0xee   : > { %v681_v23 = vadd.f32 %v680_v19, %v593_v18  ;;  %v6186_v19 = vld [vmem:[#allocation5] sm:$0xff] }
  0xef   : > { %v994_v28 = vadd.f32 %v980_v17, %v868_v22  ;;  %v1028_v17 = vsel %vm1010_vm10, %v1001_v6, %v1019_v12  ;;  %v6192_v22 = vld [vmem:[#allocation5 + $0x30] sm:$0xff]  ;;  %v6211_v15 = vld [vmem:[%s7679_s2 + $0x68] sm:$0xff] }
  0xf0   : > { %v1036_v18 = vpack.c.bf16 %v1028_v17, %v1027_v54  ;;  %v6212_v6 = vld [vmem:[%s7679_s2 + $0x70] sm:$0xff]  ;;  %v6221_v12 = vld [vmem:[%s7679_s2 + $0xb8] sm:$0xff] }
  0xf1   : > { %v1007_v41 = vadd.f32 %v6484_v34, %v994_v28  ;;  %v6245_v28 = vld [vmem:[%s7679_s2 + $0x178] sm:$0xff]  ;;  %v6228_v17 = vld [vmem:[%s7679_s2 + $0xf0] sm:$0xff] }
  0xf3   : > { %v1025_v51 = vmul.f32 0.1, %v1007_v41  ;;  %vm1016_vm3 = vcmp.ge.f32.partialorder %v1007_v41, 0.0 }
  0xf4   : > { %v857_v29 = vpop.f32.mrf.mxu2  ;;  %v595_v32 = vpop.f32.mrf.mxu0 }
  0xf5   : > { %v983_v30 = vpop.f32.mrf.mxu3  ;;  %v869_v31 = vadd.f32 %v857_v29, %v681_v23  ;;  %v682_v33 = vpop.f32.mrf.mxu1  ;;  %v1034_v55 = vsel %vm1016_vm3, %v1007_v41, %v1025_v51  ;;  %v6187_v23 = vld [vmem:[#allocation5 + $0x8] sm:$0xff]  ;;  %v6261_v32 = vld [vmem:[%s7679_s2 + $0x1f8] sm:$0xff]  ;;  %vm2853_vm3 = vcmask 162816  }
  0xf6   : > { %v1039_v61 = vpack.c.bf16 %v1034_v55, %v1033_v5  ;;  %v6236_v29 = vld [vmem:[%s7679_s2 + $0x130] sm:$0xff]  ;;  %v6235_v33 = vld [vmem:[%s7679_s2 + $0x128] sm:$0xff]  ;;  %v6233_v41 = vld [vmem:[%s7679_s2 + $0x118] sm:$0xff] }
  0xf7   : > { %v995_v38 = vadd.f32 %v983_v30, %v869_v31  ;;  %v6244_v30 = vld [vmem:[%s7679_s2 + $0x170] sm:$0xff]  ;;  %v6253_v31 = vld [vmem:[%s7679_s2 + $0x1b8] sm:$0xff] }
  0xf8   : > { %v6248_v51 = vld [vmem:[%s7679_s2 + $0x190] sm:$0xff]  ;;  %v6213_v55 = vld [vmem:[%s7679_s2 + $0x78] sm:$0xff] }
  0xf9   : > { %v1008_v43 = vadd.f32 %v6484_v34, %v995_v38  ;;  %v6243_v34 = vld [vmem:[%s7679_s2 + $0x168] sm:$0xff]  ;;  %v6242_v38 = vld [vmem:[%s7679_s2 + $0x160] sm:$0xff] }
  0xfb   : > { %vm1017_vm2 = vcmp.ge.f32.partialorder %v1008_v43, 0.0  ;;  %v1026_v48 = vmul.f32 0.1, %v1008_v43 }
  0xfc   : > { %v859_v57 = vpop.f32.mrf.mxu2 }
  0xfd   : > { %v985_v58 = vpop.f32.mrf.mxu3  ;;  %v1035_v62 = vsel %vm1017_vm2, %v1008_v43, %v1026_v48  ;;  %v6250_v43 = vld [vmem:[%s7679_s2 + $0x1a0] sm:$0xff]  ;;  %v6257_v48 = vld [vmem:[%s7679_s2 + $0x1d8] sm:$0xff]  ;;  %v6256_v57 = vld [vmem:[%s7679_s2 + $0x1d0] sm:$0xff]  ;;  %vm2857_vm2 = vcmask 1041408  }
  0xfe   : > { %v1040_v3 = vpack.c.bf16 %v1035_v62, %v1035_v62  ;;  %v6230_v58 = vld [vmem:[%s7679_s2 + $0x100] sm:$0xff] }
  0xff   : > { %v6238_v62 = vld [vmem:[%s7679_s2 + $0x140] sm:$0xff] }
 0x100   : > { %v1064_v60 = vsel %vm1062_vm4, %v1040_v3, 0 }
 0x101   : > { %1069 = vmatpush.bf16.msrb.mxu0 %v1064_v60  ;;  %1117 = vmatpush.bf16.msrb.mxu1 %v1064_v60 }
 0x102   : > { %1165 = vmatpush.bf16.msrb.mxu2 %v1064_v60  ;;  %1213 = vmatpush.bf16.msrb.mxu3 %v1064_v60  ;;  %v6246_v60 = vld [vmem:[%s7679_s2 + $0x180] sm:$0xff] }
 0x105   : > { %1070 = vmatpush.bf16.msrb.mxu0 %v1039_v61  ;;  %1118 = vmatpush.bf16.msrb.mxu1 %v1039_v61 }
 0x106   : > { %1166 = vmatpush.bf16.msrb.mxu2 %v1039_v61  ;;  %1214 = vmatpush.bf16.msrb.mxu3 %v1039_v61  ;;  %v6204_v61 = vld [vmem:[%s7679_s2 + $0x30] sm:$0xff] }
 0x109   : > { %1071 = vmatpush.bf16.msrb.mxu0 %v1038_v11  ;;  %1119 = vmatpush.bf16.msrb.mxu1 %v1038_v11 }
 0x10a   : > { %1167 = vmatpush.bf16.msrb.mxu2 %v1038_v11  ;;  %1215 = vmatpush.bf16.msrb.mxu3 %v1038_v11 }
 0x10d   : > { %1072 = vmatpush.bf16.msrb.mxu0 %v1037_v16  ;;  %1120 = vmatpush.bf16.msrb.mxu1 %v1037_v16 }
 0x10e   : > { %1168 = vmatpush.bf16.msrb.mxu2 %v1037_v16  ;;  %1216 = vmatpush.bf16.msrb.mxu3 %v1037_v16  ;;  %v6220_v16 = vld [vmem:[%s7679_s2 + $0xb0] sm:$0xff] }
 0x111   : > { %1073 = vmatpush.bf16.msrb.mxu0 %v1036_v18  ;;  %1121 = vmatpush.bf16.msrb.mxu1 %v1036_v18 }
 0x112   : > { %1169 = vmatpush.bf16.msrb.mxu2 %v1036_v18  ;;  %1217 = vmatpush.bf16.msrb.mxu3 %v1036_v18 }
 0x114   : > { %4646 = vmatmul.msk.bf16.vlgmr.msrb.gmra.mxu0 %vm1055_vm12, %v6186_v19  ;;  %4656 = vmatmul.msk.bf16.vlgmr.msrb.gmra.mxu1 %vm1055_vm12, %v6188_v20  ;;  %v6202_v19 = vld [vmem:[%s7679_s2 + $0x20] sm:$0xff] }
 0x115   : > { %4666 = vmatmul.msk.bf16.vlgmr.msrb.gmra.mxu2 %vm1055_vm12, %v6190_v21  ;;  %4676 = vmatmul.msk.bf16.vlgmr.msrb.gmra.mxu3 %vm1055_vm12, %v6192_v22  ;;  %v6210_v20 = vld [vmem:[%s7679_s2 + $0x60] sm:$0xff] }
 0x116   : > { %1660 = vmatpush.bf16.msra.mxu0 %v6237_v27  ;;  %1678 = vmatpush.bf16.msra.mxu1 %v6245_v28  ;;  %v6219_v27 = vld [vmem:[%s7679_s2 + $0xa8] sm:$0xff] }
 0x117   : > { %1696 = vmatpush.bf16.msra.mxu2 %v6253_v31  ;;  %1714 = vmatpush.bf16.msra.mxu3 %v6261_v32  ;;  %v6227_v28 = vld [vmem:[%s7679_s2 + $0xe8] sm:$0xff] }
 0x11a   : > { %1661 = vmatpush.bf16.msra.mxu0 %v6236_v29  ;;  %1679 = vmatpush.bf16.msra.mxu1 %v6244_v30 }
 0x11b   : > { %1697 = vmatpush.bf16.msra.mxu2 %v6252_v35  ;;  %1715 = vmatpush.bf16.msra.mxu3 %v6260_v36 }
 0x11e   : > { %1662 = vmatpush.bf16.msra.mxu0 %v6235_v33  ;;  %1680 = vmatpush.bf16.msra.mxu1 %v6243_v34  ;;  %v6201_v33 = vld [vmem:[%s7679_s2 + $0x18] sm:$0xff] }
 0x11f   : > { %1698 = vmatpush.bf16.msra.mxu2 %v6251_v39  ;;  %1716 = vmatpush.bf16.msra.mxu3 %v6259_v40  ;;  %v6209_v34 = vld [vmem:[%s7679_s2 + $0x58] sm:$0xff] }
 0x122   : > { %1663 = vmatpush.bf16.msra.mxu0 %v6234_v37  ;;  %1681 = vmatpush.bf16.msra.mxu1 %v6242_v38  ;;  %v6218_v37 = vld [vmem:[%s7679_s2 + $0xa0] sm:$0xff] }
 0x123   : > { %1699 = vmatpush.bf16.msra.mxu2 %v6250_v43  ;;  %1717 = vmatpush.bf16.msra.mxu3 %v6258_v44  ;;  %v6226_v38 = vld [vmem:[%s7679_s2 + $0xe0] sm:$0xff] }
 0x124   : > { %4647 = vmatmul.msk.bf16.gmra.mxu0 %vm1055_vm12, %v6187_v23  ;;  %4657 = vmatmul.msk.bf16.gmra.mxu1 %vm1055_vm12, %v6189_v24 }
 0x125   : > { %4667 = vmatmul.msk.bf16.gmra.mxu2 %vm1055_vm12, %v6191_v25  ;;  %4677 = vmatmul.msk.bf16.gmra.mxu3 %vm1055_vm12, %v6193_v26 }
 0x126   : > { %1664 = vmatpush.bf16.msra.mxu0 %v6233_v41  ;;  %1682 = vmatpush.bf16.msra.mxu1 %v6241_v42  ;;  %v6200_v41 = vld [vmem:[%s7679_s2 + $0x10] sm:$0xff] }
 0x127   : > { %1700 = vmatpush.bf16.msra.mxu2 %v6249_v47  ;;  %1718 = vmatpush.bf16.msra.mxu3 %v6257_v48  ;;  %v6208_v42 = vld [vmem:[%s7679_s2 + $0x50] sm:$0xff] }
 0x12a   : > { %1665 = vmatpush.bf16.msra.mxu0 %v6232_v45  ;;  %1683 = vmatpush.bf16.msra.mxu1 %v6240_v46 }
 0x12b   : > { %1701 = vmatpush.bf16.msra.mxu2 %v6248_v51  ;;  %1719 = vmatpush.bf16.msra.mxu3 %v6256_v57 }
 0x12e   : > { %1666 = vmatpush.bf16.msra.mxu0 %v6231_v49  ;;  %1684 = vmatpush.bf16.msra.mxu1 %v6239_v50 }
 0x12f   : > { %1702 = vmatpush.bf16.msra.mxu2 %v6247_v52  ;;  %1720 = vmatpush.bf16.msra.mxu3 %v6255_v53 }
 0x132   : > { %1667 = vmatpush.bf16.msra.mxu0 %v6230_v58  ;;  %1685 = vmatpush.bf16.msra.mxu1 %v6238_v62 }
 0x133   : > { %1703 = vmatpush.bf16.msra.mxu2 %v6246_v60  ;;  %1721 = vmatpush.bf16.msra.mxu3 %v6254_v1  ;;  %v6207_v60 = vld [vmem:[%s7679_s2 + $0x48] sm:$0xff] }
 0x136   : > { %1942 = vmatpush.bf16.msrb.mxu0 %v6205_v59  ;;  %1960 = vmatpush.bf16.msrb.mxu1 %v6213_v55  ;;  %v6199_v55 = vld [vmem:[%s7679_s2 + $0x8] sm:$0xff] }
 0x137   : > { %1978 = vmatpush.bf16.msrb.mxu2 %v6221_v12  ;;  %1996 = vmatpush.bf16.msrb.mxu3 %v6229_v13  ;;  %v6206_v12 = vld [vmem:[%s7679_s2 + $0x40] sm:$0xff] }
 0x13a   : > { %1943 = vmatpush.bf16.msrb.mxu0 %v6204_v61  ;;  %1961 = vmatpush.bf16.msrb.mxu1 %v6212_v6  ;;  %v6216_v6 = vld [vmem:[%s7679_s2 + $0x90] sm:$0xff] }
 0x13b   : > { %1979 = vmatpush.bf16.msrb.mxu2 %v6220_v16  ;;  %1997 = vmatpush.bf16.msrb.mxu3 %v6228_v17 }
 0x13e   : > { %1944 = vmatpush.bf16.msrb.mxu0 %v6203_v14  ;;  %1962 = vmatpush.bf16.msrb.mxu1 %v6211_v15 }
 0x13f   : > { %1980 = vmatpush.bf16.msrb.mxu2 %v6219_v27  ;;  %1998 = vmatpush.bf16.msrb.mxu3 %v6227_v28 }
 0x142   : > { %1945 = vmatpush.bf16.msrb.mxu0 %v6202_v19  ;;  %1963 = vmatpush.bf16.msrb.mxu1 %v6210_v20 }
 0x143   : > { %1981 = vmatpush.bf16.msrb.mxu2 %v6218_v37  ;;  %1999 = vmatpush.bf16.msrb.mxu3 %v6226_v38  ;;  %v6214_v37 = vld [vmem:[%s7679_s2 + $0x80] sm:$0xff] }
 0x146   : > { %1946 = vmatpush.bf16.msrb.mxu0 %v6201_v33  ;;  %1964 = vmatpush.bf16.msrb.mxu1 %v6209_v34  ;;  %v6273_v33 = vld [vmem:[%s7679_s2 + $0x238] sm:$0xff] }
 0x147   : > { %v6281_v34 = vld [vmem:[%s7679_s2 + $0x278] sm:$0xff] }
 0x14a   : > { %1947 = vmatpush.bf16.msrb.mxu0 %v6200_v41  ;;  %1965 = vmatpush.bf16.msrb.mxu1 %v6208_v42  ;;  %v6222_v42 = vld [vmem:[%s7679_s2 + $0xc0] sm:$0xff] }
 0x14e   : > { %1948 = vmatpush.bf16.msrb.mxu0 %v6199_v55  ;;  %1966 = vmatpush.bf16.msrb.mxu1 %v6207_v60  ;;  %v6278_v55 = vld [vmem:[%s7679_s2 + $0x260] sm:$0xff]  ;;  %v6287_v60 = vld [vmem:[%s7679_s2 + $0x2a8] sm:$0xff] }
 0x152   : > { %1967 = vmatpush.bf16.msrb.mxu1 %v6206_v12 }
 0x191   : > { %v1075_v63 = vpop.f32.mrf.mxu0  ;;  %v1123_v0 = vpop.f32.mrf.mxu1 }
 0x192   : > { %v1085_v2 = vpack.c.bf16 %v1075_v63, %v1075_v63  ;;  %v1133_v3 = vpack.c.bf16 %v1123_v0, %v1123_v0  ;;  %v6217_v63 = vld [vmem:[%s7679_s2 + $0x98] sm:$0xff] }
 0x193   : > { %v6225_v0 = vld [vmem:[%s7679_s2 + $0xd8] sm:$0xff]  ;;  %1982 = vmatpush.bf16.msrb.mxu2 %v6217_v63  ;;  %v6288_v63 = vld [vmem:[%s7679_s2 + $0x2b0] sm:$0xff] }
 0x194   : > { %1089 = vst [vmem:[#allocation2] sm:$0xf] %v1085_v2  ;;  %2000 = vmatpush.bf16.msrb.mxu3 %v6225_v0  ;;  %v6296_v0 = vld [vmem:[%s7679_s2 + $0x2f0] sm:$0xff] }
 0x195   : > { %1137 = vst [vmem:[#allocation2 + $0x4] sm:$0xf] %v1133_v3 }
 0x197   : > { %1983 = vmatpush.bf16.msrb.mxu2 %v6216_v6  ;;  %v6277_v6 = vld [vmem:[%s7679_s2 + $0x258] sm:$0xff] }
 0x198   : > { %v1171_v4 = vpop.f32.mrf.mxu2  ;;  %v1219_v5 = vpop.f32.mrf.mxu3 }
 0x199   : > { %v1181_v7 = vpack.c.bf16 %v1171_v4, %v1171_v4  ;;  %v1229_v8 = vpack.c.bf16 %v1219_v5, %v1219_v5  ;;  %v1077_v56 = vpop.f32.mrf.mxu0  ;;  %v1125_v9 = vpop.f32.mrf.mxu1 }
 0x19a   : > { %v1086_v10 = vpack.c.bf16 %v1077_v56, %v1077_v56  ;;  %v1134_v11 = vpack.c.bf16 %v1125_v9, %v1125_v9 }
 0x19b   : > { %1185 = vst [vmem:[#allocation2 + $0x8] sm:$0xf] %v1181_v7  ;;  %v4744_v29 = vld [vmem:[#allocation2] sm:$0xf]  ;;  %v6224_v7 = vld [vmem:[%s7679_s2 + $0xd0] sm:$0xff] }
 0x19c   : > { %1233 = vst [vmem:[#allocation2 + $0xc] sm:$0xf] %v1229_v8  ;;  %v6194_v31 = vld [vmem:[#allocation2 + $0x4] sm:$0xf]  ;;  %2001 = vmatpush.bf16.msrb.mxu3 %v6224_v7 }
 0x19d   : > { %1090 = vst [vmem:[#allocation2 + $0x10] sm:$0xf] %v1086_v10  ;;  %v6286_v7 = vld [vmem:[%s7679_s2 + $0x2a0] sm:$0xff] }
 0x19e   : > { %1138 = vst [vmem:[#allocation2 + $0x14] sm:$0xf] %v1134_v11  ;;  %v6198_v11 = vld [vmem:[%s7679_s2] sm:$0xff] }
 0x19f   : > { %1949 = vmatpush.bf16.msrb.mxu0 %v6198_v11  ;;  %v6276_v11 = vld [vmem:[%s7679_s2 + $0x250] sm:$0xff] }
 0x1a0   : > { %v1173_v54 = vpop.f32.mrf.mxu2  ;;  %v1221_v18 = vpop.f32.mrf.mxu3 }
 0x1a1   : > { %v1182_v21 = vpack.c.bf16 %v1173_v54, %v1173_v54  ;;  %v1230_v22 = vpack.c.bf16 %v1221_v18, %v1221_v18  ;;  %v1080_v23 = vpop.f32.mrf.mxu0  ;;  %v1128_v24 = vpop.f32.mrf.mxu1  ;;  %v6215_v18 = vld [vmem:[%s7679_s2 + $0x88] sm:$0xff] }
 0x1a2   : > { %v1087_v25 = vpack.c.bf16 %v1080_v23, %v1080_v23  ;;  %v1135_v26 = vpack.c.bf16 %v1128_v24, %v1128_v24  ;;  %v4752_v47 = vld [vmem:[#allocation2 + $0x8] sm:$0xf]  ;;  %1984 = vmatpush.bf16.msrb.mxu2 %v6215_v18  ;;  %v6292_v18 = vld [vmem:[%s7679_s2 + $0x2d0] sm:$0xff] }
 0x1a3   : > { %1186 = vst [vmem:[#allocation2 + $0x18] sm:$0xf] %v1182_v21  ;;  %v6195_v62 = vld [vmem:[#allocation2 + $0xc] sm:$0xf] }
 0x1a4   : > { %1234 = vst [vmem:[#allocation2 + $0x1c] sm:$0xf] %v1230_v22  ;;  %v6196_v30 = vld [vmem:[#allocation2 + $0xc] sm:$0xf0] }
 0x1a5   : > { %1091 = vst [vmem:[#allocation2 + $0x20] sm:$0xf] %v1087_v25  ;;  %v4746_v32 = vld [vmem:[#allocation2 + $0x10] sm:$0xf0]  ;;  %v6905_v35 = vor.u32 %v6196_v30, %v4744_v29 }
 0x1a6   : > { %1139 = vst [vmem:[#allocation2 + $0x24] sm:$0xf] %v1135_v26  ;;  %v6907_v36 = vor.u32 %v6194_v31, %v4746_v32  ;;  %v6223_v26 = vld [vmem:[%s7679_s2 + $0xc8] sm:$0xff]  ;;  %1985 = vmatpush.bf16.msrb.mxu2 %v6214_v37 }
 0x1a7   : > { %v1403_v51 = vshll.u32 %v6905_v35, 16  ;;  %v1401_v1 = vshrl.u32 %v6905_v35, 16  ;;  %2002 = vmatpush.bf16.msrb.mxu3 %v6223_v26  ;;  %v6312_v26 = vld [vmem:[%s7679_s2 + $0x370] sm:$0xff] }
 0x1a8   : > { %v1176_v39 = vpop.f32.mrf.mxu2  ;;  %v1224_v40 = vpop.f32.mrf.mxu3  ;;  %v1415_v57 = vshll.u32 %v6907_v36, 16  ;;  %v1413_v5 = vshrl.u32 %v6907_v36, 16 }
 0x1a9   : > { %v1183_v43 = vpack.c.bf16 %v1176_v39, %v1176_v39  ;;  %v1231_v44 = vpack.c.bf16 %v1224_v40, %v1224_v40  ;;  %v1082_v45 = vpop.f32.mrf.mxu0  ;;  %v1130_v46 = vpop.f32.mrf.mxu1  ;;  %v1405_v4 = vrot.slane %v1403_v51, 1  ;;  %v6289_v51 = vld [vmem:[%s7679_s2 + $0x2b8] sm:$0xff] }
 0x1aa   : > { %v6197_v48 = vld [vmem:[#allocation2 + $0x14] sm:$0xf0]  ;;  %v1088_v49 = vpack.c.bf16 %v1082_v45, %v1082_v45  ;;  %v1136_v50 = vpack.c.bf16 %v1130_v46, %v1130_v46  ;;  %v1417_v61 = vrot.slane %v1415_v57, 1 }
 0x1ab   : > { %1187 = vst [vmem:[#allocation2 + $0x28] sm:$0xf] %v1183_v43  ;;  %v4754_v58 = vld [vmem:[#allocation2 + $0x18] sm:$0xf0]  ;;  %v6929_v3 = vor.u32 %v6197_v48, %v4752_v47  ;;  %v1406_v19 = vor.u32 %v1405_v4, %v1401_v1  ;;  %v6272_v47 = vld [vmem:[%s7679_s2 + $0x230] sm:$0xff]  ;;  %2003 = vmatpush.bf16.msrb.mxu3 %v6222_v42  ;;  %v6295_v1 = vld [vmem:[%s7679_s2 + $0x2e8] sm:$0xff] }
 0x1ac   : > { %1235 = vst [vmem:[#allocation2 + $0x2c] sm:$0xf] %v1231_v44  ;;  %v6931_v52 = vor.u32 %v6195_v62, %v4754_v58  ;;  %v1418_v20 = vor.u32 %v1417_v61, %v1413_v5  ;;  %v6280_v48 = vld [vmem:[%s7679_s2 + $0x270] sm:$0xff]  ;;  %v6297_v57 = vld [vmem:[%s7679_s2 + $0x2f8] sm:$0xff]  ;;  %v6271_v58 = vld [vmem:[%s7679_s2 + $0x228] sm:$0xff] }
 0x1ad   : > { %v1307_v2 = vld [vmem:[#allocation2 + $0x20] sm:$0x77]  ;;  %1092 = vst [vmem:[#allocation2 + $0x30] sm:$0xf] %v1088_v49  ;;  %v1427_v13 = vshll.u32 %v6929_v3, 16  ;;  %v1425_v38 = vshrl.u32 %v6929_v3, 16 }
 0x1ae   : > { %v1388_v53 = vunpack.c.l.b16 %v1307_v2  ;;  %v1389_v59 = vunpack.c.h.b16 %v1307_v2  ;;  %1140 = vst [vmem:[#allocation2 + $0x34] sm:$0xf] %v1136_v50  ;;  %v1439_v14 = vshll.u32 %v6931_v52, 16  ;;  %v1437_v40 = vshrl.u32 %v6931_v52, 16  ;;  %v6279_v62 = vld [vmem:[%s7679_s2 + $0x268] sm:$0xff]  ;;  %v6269_v61 = vld [vmem:[%s7679_s2 + $0x218] sm:$0xff] }
 0x1af   : > { %v1429_v27 = vrot.slane %v1427_v13, 1  ;;  %v6302_v42 = vld [vmem:[%s7679_s2 + $0x320] sm:$0xff] }
 0x1b0   : > { %v6947_v8 = vpack.c.b16 %v1388_v53, %v1388_v53  ;;  %v6949_v56 = vpack.c.b16 %v1389_v59, %v1389_v59  ;;  %v1178_v9 = vpop.f32.mrf.mxu2  ;;  %v1226_v10 = vpop.f32.mrf.mxu3  ;;  %v1441_v28 = vrot.slane %v1439_v14, 1  ;;  %v6270_v59 = vld [vmem:[%s7679_s2 + $0x220] sm:$0xff]  ;;  %v6285_v14 = vld [vmem:[%s7679_s2 + $0x298] sm:$0xff] }
 0x1b1   : > { %v1184_v15 = vpack.c.bf16 %v1178_v9, %v1178_v9  ;;  %v1232_v16 = vpack.c.bf16 %v1226_v10, %v1226_v10  ;;  %v1430_v43 = vor.u32 %v1429_v27, %v1425_v38  ;;  %v6268_v10 = vld [vmem:[%s7679_s2 + $0x210] sm:$0xff]  ;;  %v2014_v27 = vld [vmem:[#allocation2] sm:$0xcc] }
 0x1b2   : > { %v1408_v17 = vshll.u32 %v6947_v8, 16  ;;  %v1420_v54 = vshll.u32 %v6949_v56, 16  ;;  %v1442_v45 = vor.u32 %v1441_v28, %v1437_v40  ;;  %v1448_v2 = vshrl.u32 %v6947_v8, 16  ;;  %v6294_v8 = vld [vmem:[%s7679_s2 + $0x2e0] sm:$0xff]  ;;  %v7101_v28 = vld [vmem:[#allocation2 + $0x10] sm:$0xff] }
 0x1b3   : > { %v1308_v21 = vld [vmem:[#allocation2 + $0x28] sm:$0x77]  ;;  %1188 = vst [vmem:[#allocation2 + $0x38] sm:$0xf] %v1184_v15  ;;  %v1451_v53 = vshrl.u32 %v6949_v56, 16  ;;  %v6293_v15 = vld [vmem:[%s7679_s2 + $0x2d8] sm:$0xff]  ;;  %v2099_v37 = vunpack.c.l.b16 %v7101_v28 }
 0x1b4   : > { %v1410_v22 = vrot.slane %v1408_v17, 1  ;;  %v1422_v23 = vrot.slane %v1420_v54, 1  ;;  %v1390_v24 = vunpack.c.l.b16 %v1308_v21  ;;  %v1391_v25 = vunpack.c.h.b16 %v1308_v21  ;;  %1236 = vst [vmem:[#allocation2 + $0x3c] sm:$0xf] %v1232_v16  ;;  %v6267_v16 = vld [vmem:[%s7679_s2 + $0x208] sm:$0xff]  ;;  %v6284_v54 = vld [vmem:[%s7679_s2 + $0x290] sm:$0xff] }
 0x1b5   : > { %v6275_v17 = vld [vmem:[%s7679_s2 + $0x248] sm:$0xff]  ;;  %v5080_v40 = vld [vmem:[#allocation2 + $0x20] sm:$0xf] }
 0x1b6   : > { %v1411_v29 = vsel %vm471_vm0, %v1406_v19, %v1410_v22  ;;  %v1423_v30 = vsel %vm471_vm0, %v1418_v20, %v1422_v23  ;;  %v6969_v31 = vpack.c.b16 %v1390_v24, %v1390_v24  ;;  %v6971_v32 = vpack.c.b16 %v1391_v25, %v1391_v25  ;;  %v6266_v19 = vld [vmem:[%s7679_s2 + $0x200] sm:$0xff]  ;;  %v6283_v21 = vld [vmem:[%s7679_s2 + $0x288] sm:$0xff]  ;;  %v6313_v24 = vld [vmem:[%s7679_s2 + $0x378] sm:$0xff] }
 0x1b7   : > { %1668 = vmatmul.bf16.vlgmr.msra.gmra.mxu0 %v1411_v29  ;;  %1686 = vmatmul.bf16.vlgmr.msra.gmra.mxu1 %v1423_v30  ;;  %v1450_v4 = vor.u32 %v1448_v2, %v1410_v22  ;;  %v1453_v5 = vor.u32 %v1451_v53, %v1422_v23  ;;  %v6274_v20 = vld [vmem:[%s7679_s2 + $0x240] sm:$0xff]  ;;  %v6291_v22 = vld [vmem:[%s7679_s2 + $0x2c8] sm:$0xff]  ;;  %v6305_v23 = vld [vmem:[%s7679_s2 + $0x338] sm:$0xff] }
 0x1b8   : > { %v1432_v39 = vshll.u32 %v6969_v31, 16  ;;  %v1444_v41 = vshll.u32 %v6971_v32, 16  ;;  %2388 = vmatpush.bf16.msra.mxu0 %v6273_v33  ;;  %2406 = vmatpush.bf16.msra.mxu1 %v6281_v34  ;;  %v1454_v56 = vshrl.u32 %v6969_v31, 16  ;;  %v1457_v9 = vshrl.u32 %v6971_v32, 16  ;;  %v6282_v25 = vld [vmem:[%s7679_s2 + $0x280] sm:$0xff]  ;;  %v6321_v29 = vld [vmem:[%s7679_s2 + $0x3b8] sm:$0xff] }
 0x1b9   : > { %v6329_v30 = vld [vmem:[%s7679_s2 + $0x3f8] sm:$0xff]  ;;  %v1241_v31 = vld [vmem:[#allocation2 + $0x20] sm:$0x33]  ;;  %v6303_v32 = vld [vmem:[%s7679_s2 + $0x328] sm:$0xff]  ;;  %v2095_v34 = vunpack.c.l.b16 %v2014_v27 }
 0x1ba   : > { %v1434_v44 = vrot.slane %v1432_v39, 1  ;;  %v1446_v46 = vrot.slane %v1444_v41, 1  ;;  %v6328_v33 = vld [vmem:[%s7679_s2 + $0x3f0] sm:$0xff]  ;;  %v1734_v38 = vunpack.c.l.b16 %v1241_v31  ;;  %v1735_v39 = vunpack.c.h.b16 %v1241_v31  ;;  %v7143_v2 = vld [vmem:[#allocation2 + $0x18] sm:$0xff] }
 0x1bb   : > { %v6264_v41 = vld [vmem:[#allocation2 + $0x2c] sm:$0x10] }
 0x1bc   : > { %v1435_v49 = vsel %vm471_vm0, %v1430_v43, %v1434_v44  ;;  %v1447_v50 = vsel %vm471_vm0, %v1442_v45, %v1446_v46  ;;  %2389 = vmatpush.bf16.msra.mxu0 %v6272_v47  ;;  %2407 = vmatpush.bf16.msra.mxu1 %v6280_v48  ;;  %v1456_v12 = vor.u32 %v1454_v56, %v1434_v44  ;;  %v6310_v43 = vld [vmem:[%s7679_s2 + $0x360] sm:$0xff]  ;;  %v5082_v45 = vld [vmem:[#allocation2 + $0x30] sm:$0x10]  ;;  %v2100_v47 = vunpack.c.h.b16 %v7101_v28  ;;  %v1242_v48 = vld [vmem:[#allocation2 + $0x28] sm:$0x33] }
 0x1bd   : > { %1704 = vmatmul.bf16.vlgmr.msra.gmra.mxu2 %v1435_v49  ;;  %1722 = vmatmul.bf16.vlgmr.msra.gmra.mxu3 %v1447_v50  ;;  %v1459_v13 = vor.u32 %v1457_v9, %v1446_v46  ;;  %v6262_v44 = vld [vmem:[#allocation2 + $0x24] sm:$0xf]  ;;  %v2096_v46 = vunpack.c.h.b16 %v2014_v27  ;;  %v7131_v49 = vpack.c.b16 %v2099_v37, %v2095_v34  ;;  %v6319_v50 = vld [vmem:[%s7679_s2 + $0x3a8] sm:$0xff]  ;;  %v1736_v53 = vunpack.c.l.b16 %v1242_v48  ;;  %v6325_v27 = vld [vmem:[%s7679_s2 + $0x3d8] sm:$0xff] }
 0x1be   : > { %2424 = vmatpush.bf16.msra.mxu2 %v6289_v51  ;;  %2442 = vmatpush.bf16.msra.mxu3 %v6297_v57  ;;  %v6327_v51 = vld [vmem:[%s7679_s2 + $0x3e8] sm:$0xff]  ;;  %v1738_v57 = vpack.c.b16 %v1734_v38, %v1734_v38  ;;  %v2101_v9 = vunpack.c.l.b16 %v7143_v2 }
 0x1c0   : > { %2390 = vmatpush.bf16.msra.mxu0 %v6271_v58  ;;  %2408 = vmatpush.bf16.msra.mxu1 %v6279_v62  ;;  %v1739_v58 = vpack.c.b16 %v1735_v39, %v1735_v39  ;;  %v7139_v62 = vor.u32 %v6264_v41, %v5080_v40 }
 0x1c2   : > { %2425 = vmatpush.bf16.msra.mxu2 %v6288_v63  ;;  %2443 = vmatpush.bf16.msra.mxu3 %v6296_v0  ;;  %v7141_v63 = vor.u32 %v6262_v44, %v5082_v45  ;;  %v2015_v0 = vld [vmem:[#allocation2 + $0x8] sm:$0xcc]  ;;  %v6324_v44 = vld [vmem:[%s7679_s2 + $0x3d0] sm:$0xff] }
 0x1c3   : > { %v2097_v56 = vunpack.c.l.b16 %v2015_v0 }
 0x1c4   : > { %2391 = vmatpush.bf16.msra.mxu0 %v6270_v59  ;;  %2409 = vmatpush.bf16.msra.mxu1 %v6278_v55  ;;  %v1737_v59 = vunpack.c.h.b16 %v1242_v48  ;;  %v2112_v55 = vpack.c.b16 %v2100_v47, %v2096_v46 }
 0x1c6   : > { %2426 = vmatpush.bf16.msra.mxu2 %v6287_v60  ;;  %2444 = vmatpush.bf16.msra.mxu3 %v6295_v1  ;;  %v6301_v60 = vld [vmem:[%s7679_s2 + $0x318] sm:$0xff] }
 0x1c7   : > { %1673 = vmatmul.bf16.gmra.mxu0 %v1450_v4  ;;  %1691 = vmatmul.bf16.gmra.mxu1 %v1453_v5  ;;  %v6309_v1 = vld [vmem:[%s7679_s2 + $0x358] sm:$0xff]  ;;  %v2121_v4 = vshrl.u32 %v7131_v49, 16  ;;  %v6318_v5 = vld [vmem:[%s7679_s2 + $0x3a0] sm:$0xff] }
 0x1c8   : > { %2392 = vmatpush.bf16.msra.mxu0 %v6269_v61  ;;  %2410 = vmatpush.bf16.msra.mxu1 %v6277_v6  ;;  %v6326_v61 = vld [vmem:[%s7679_s2 + $0x3e0] sm:$0xff]  ;;  %v2129_v6 = vshrl.u32 %v7139_v62, 16 }
 0x1ca   : > { %2427 = vmatpush.bf16.msra.mxu2 %v6286_v7  ;;  %2445 = vmatpush.bf16.msra.mxu3 %v6294_v8  ;;  %v2132_v7 = vshll.u32 %v7139_v62, 16  ;;  %v6265_v8 = vld [vmem:[#allocation2 + $0x34] sm:$0x10] }
 0x1cc   : > { %2393 = vmatpush.bf16.msra.mxu0 %v6268_v10  ;;  %2411 = vmatpush.bf16.msra.mxu1 %v6276_v11  ;;  %v5090_v10 = vld [vmem:[#allocation2 + $0x38] sm:$0x10]  ;;  %v2124_v11 = vshll.u32 %v7131_v49, 16 }
 0x1cd   : > { %1709 = vmatmul.bf16.gmra.mxu2 %v1456_v12  ;;  %1727 = vmatmul.bf16.gmra.mxu3 %v1459_v13  ;;  %v2146_v12 = vshrl.u32 %v7141_v63, 16  ;;  %v2149_v13 = vshll.u32 %v7141_v63, 16 }
 0x1ce   : > { %2428 = vmatpush.bf16.msra.mxu2 %v6285_v14  ;;  %2446 = vmatpush.bf16.msra.mxu3 %v6293_v15  ;;  %v2102_v14 = vunpack.c.h.b16 %v7143_v2  ;;  %v6300_v15 = vld [vmem:[%s7679_s2 + $0x310] sm:$0xff] }
 0x1d0   : > { %2394 = vmatpush.bf16.msra.mxu0 %v6267_v16  ;;  %2412 = vmatpush.bf16.msra.mxu1 %v6275_v17  ;;  %v6308_v16 = vld [vmem:[%s7679_s2 + $0x350] sm:$0xff]  ;;  %v1740_v17 = vpack.c.b16 %v1736_v53, %v1736_v53 }
 0x1d2   : > { %2429 = vmatpush.bf16.msra.mxu2 %v6284_v54  ;;  %2447 = vmatpush.bf16.msra.mxu3 %v6292_v18  ;;  %v1741_v54 = vpack.c.b16 %v1737_v59, %v1737_v59  ;;  %v2138_v18 = vshrl.u32 %v2112_v55, 16 }
 0x1d4   : > { %2395 = vmatpush.bf16.msra.mxu0 %v6266_v19  ;;  %2413 = vmatpush.bf16.msra.mxu1 %v6274_v20  ;;  %v2141_v19 = vshll.u32 %v2112_v55, 16  ;;  %v5088_v20 = vld [vmem:[#allocation2 + $0x28] sm:$0xf]  ;;  %v2140_v34 = vrot.slane %v2138_v18, 2 }
 0x1d6   : > { %2430 = vmatpush.bf16.msra.mxu2 %v6283_v21  ;;  %2448 = vmatpush.bf16.msra.mxu3 %v6291_v22  ;;  %v6263_v21 = vld [vmem:[#allocation2 + $0x2c] sm:$0xf]  ;;  %v7173_v22 = vor.u32 %v6265_v8, %v5088_v20  ;;  %v2143_v38 = vrot.slane %v2141_v19, 3  ;;  %v2463_v19 = vld [vmem:[#allocation2] sm:$0x88] }
 0x1d7   : > { %1950 = vmatmul.bf16.vlgmr.msrb.gmra.mxu0 %v6905_v35  ;;  %1968 = vmatmul.bf16.vlgmr.msrb.gmra.mxu1 %v6907_v36  ;;  %v6290_v35 = vld [vmem:[%s7679_s2 + $0x2c0] sm:$0xff]  ;;  %v6304_v36 = vld [vmem:[%s7679_s2 + $0x330] sm:$0xff]  ;;  %v2532_v20 = vunpack.c.l.b16 %v2463_v19 }
 0x1d8   : > { %2753 = vmatpush.bf16.msrb.mxu0 %v6305_v23  ;;  %2771 = vmatpush.bf16.msrb.mxu1 %v6313_v24  ;;  %v2098_v23 = vunpack.c.h.b16 %v2015_v0  ;;  %v7175_v24 = vor.u32 %v6263_v21, %v5090_v10  ;;  %v2163_v39 = vshrl.u32 %v7173_v22, 16  ;;  %v2166_v40 = vshll.u32 %v7173_v22, 16 }
 0x1d9   : > { %v2144_v53 = vor.u32 %v2143_v38, %v2140_v34  ;;  %v2533_v21 = vunpack.c.h.b16 %v2463_v19 }
 0x1da   : > { %2431 = vmatpush.bf16.msra.mxu2 %v6282_v25  ;;  %2449 = vmatpush.bf16.msra.mxu3 %v6290_v35  ;;  %v2131_v25 = vrot.slane %v2129_v6, 2  ;;  %v2134_v35 = vrot.slane %v2132_v7, 3  ;;  %v2114_v31 = vpack.c.b16 %v2102_v14, %v2098_v23  ;;  %v2180_v41 = vshrl.u32 %v7175_v24, 16 }
 0x1db   : > { %v2165_v59 = vrot.slane %v2163_v39, 2  ;;  %v2168_v55 = vrot.slane %v2166_v40, 3  ;;  %v2536_v23 = vpack.c.b16 %v2099_v37, %v2532_v20 }
 0x1dc   : > { %2754 = vmatpush.bf16.msrb.mxu0 %v6304_v36  ;;  %2772 = vmatpush.bf16.msrb.mxu1 %v6312_v26  ;;  %v2113_v36 = vpack.c.b16 %v2101_v9, %v2097_v56  ;;  %v6317_v26 = vld [vmem:[%s7679_s2 + $0x398] sm:$0xff]  ;;  %v2135_v45 = vor.u32 %v2134_v35, %v2131_v25  ;;  %v2537_v25 = vpack.c.b16 %v2100_v47, %v2533_v21  ;;  %v2464_v35 = vld [vmem:[#allocation2 + $0x8] sm:$0x88]  ;;  %v2548_v47 = vrot.slane %v7173_v22, 3 }
 0x1dd   : > { %1986 = vmatmul.bf16.vlgmr.msrb.gmra.mxu2 %v6929_v3  ;;  %2004 = vmatmul.bf16.vlgmr.msrb.gmra.mxu3 %v6931_v52  ;;  %v6311_v3 = vld [vmem:[%s7679_s2 + $0x368] sm:$0xff]  ;;  %v6320_v52 = vld [vmem:[%s7679_s2 + $0x3b0] sm:$0xff] }
 0x1de   : > { %2789 = vmatpush.bf16.msrb.mxu2 %v6321_v29  ;;  %2807 = vmatpush.bf16.msrb.mxu3 %v6329_v30  ;;  %v2148_v29 = vrot.slane %v2146_v12, 2  ;;  %v2151_v30 = vrot.slane %v2149_v13, 3  ;;  %v2155_v46 = vshrl.u32 %v2113_v36, 16  ;;  %v2158_v49 = vshll.u32 %v2113_v36, 16  ;;  %v6314_v13 = vld [vmem:[%s7679_s2 + $0x380] sm:$0xff] }
 0x1df   : > { %v2542_v36 = vrot.slane %v7139_v62, 3  ;;  %v2551_v62 = vrot.slane %v7175_v24, 3 }
 0x1e0   : > { %2755 = vmatpush.bf16.msrb.mxu0 %v6303_v32  ;;  %2773 = vmatpush.bf16.msrb.mxu1 %v6311_v3  ;;  %v6299_v32 = vld [vmem:[%s7679_s2 + $0x308] sm:$0xff]  ;;  %v2152_v48 = vor.u32 %v2151_v30, %v2148_v29  ;;  %v2157_v6 = vrot.slane %v2155_v46, 2  ;;  %v2160_v8 = vrot.slane %v2158_v49, 3  ;;  %v2544_v29 = vrot.slane %v2537_v25, 3 }
 0x1e1   : > { %v6307_v3 = vld [vmem:[%s7679_s2 + $0x348] sm:$0xff]  ;;  %v2534_v30 = vunpack.c.l.b16 %v2464_v35 }
 0x1e2   : > { %2790 = vmatpush.bf16.msrb.mxu2 %v6320_v52  ;;  %2808 = vmatpush.bf16.msrb.mxu3 %v6328_v33  ;;  %v2123_v52 = vrot.slane %v2121_v4, 2  ;;  %v2126_v33 = vrot.slane %v2124_v11, 3  ;;  %v6315_v4 = vld [vmem:[%s7679_s2 + $0x388] sm:$0xff]  ;;  %v2153_v7 = vsel %vm2119_vm13, %v2144_v53, %v2152_v48  ;;  %v2169_v11 = vor.u32 %v2168_v55, %v2165_v59 }
 0x1e3   : > { %v2538_v37 = vpack.c.b16 %v2101_v9, %v2534_v30 }
 0x1e4   : > { %2756 = vmatpush.bf16.msrb.mxu0 %v6302_v42  ;;  %2774 = vmatpush.bf16.msrb.mxu1 %v6310_v43  ;;  %v2183_v42 = vshll.u32 %v7175_v24, 16  ;;  %v6316_v43 = vld [vmem:[%s7679_s2 + $0x390] sm:$0xff]  ;;  %v2127_v0 = vor.u32 %v2126_v33, %v2123_v52 }
 0x1e6   : > { %2791 = vmatpush.bf16.msrb.mxu2 %v6319_v50  ;;  %2809 = vmatpush.bf16.msrb.mxu3 %v6327_v51  ;;  %v2172_v50 = vshrl.u32 %v2114_v31, 16  ;;  %v2175_v51 = vshll.u32 %v2114_v31, 16  ;;  %v2535_v31 = vunpack.c.h.b16 %v2464_v35 }
 0x1e7   : > { %1955 = vmatmul.bf16.gmra.mxu0 %v1738_v57  ;;  %1973 = vmatmul.bf16.gmra.mxu1 %v1739_v58  ;;  %v6298_v57 = vld [vmem:[%s7679_s2 + $0x300] sm:$0xff] }
 0x1e8   : > { %2757 = vmatpush.bf16.msrb.mxu0 %v6301_v60  ;;  %2775 = vmatpush.bf16.msrb.mxu1 %v6309_v1  ;;  %v6306_v58 = vld [vmem:[%s7679_s2 + $0x340] sm:$0xff]  ;;  %v2182_v60 = vrot.slane %v2180_v41, 2  ;;  %v2185_v1 = vrot.slane %v2183_v42, 3  ;;  %v2174_v56 = vrot.slane %v2172_v50, 2  ;;  %v2177_v10 = vrot.slane %v2175_v51, 3 }
 0x1e9   : > { %v2539_v28 = vpack.c.b16 %v2102_v14, %v2535_v31 }
 0x1ea   : > { %2792 = vmatpush.bf16.msrb.mxu2 %v6318_v5  ;;  %2810 = vmatpush.bf16.msrb.mxu3 %v6326_v61  ;;  %v6323_v5 = vld [vmem:[%s7679_s2 + $0x3c8] sm:$0xff]  ;;  %v2136_v61 = vsel %vm2119_vm13, %v2127_v0, %v2135_v45  ;;  %v2186_v12 = vor.u32 %v2185_v1, %v2182_v60 }
 0x1eb   : > { %v2550_v52 = vrot.slane %v2539_v28, 3 }
 0x1ec   : > { %2758 = vmatpush.bf16.msrb.mxu0 %v6300_v15  ;;  %2776 = vmatpush.bf16.msrb.mxu1 %v6308_v16  ;;  %v6322_v15 = vld [vmem:[%s7679_s2 + $0x3c0] sm:$0xff]  ;;  %v2161_v16 = vor.u32 %v2160_v8, %v2157_v6 }
 0x1ed   : > { %1991 = vmatmul.bf16.gmra.mxu2 %v1740_v17  ;;  %2009 = vmatmul.bf16.gmra.mxu3 %v1741_v54  ;;  %v2178_v17 = vor.u32 %v2177_v10, %v2174_v56  ;;  %v2552_v34 = vsel %vm2540_vm14, %v2550_v52, %v2551_v62 }
 0x1ee   : > { %2793 = vmatpush.bf16.msrb.mxu2 %v6317_v26  ;;  %2811 = vmatpush.bf16.msrb.mxu3 %v6325_v27  ;;  %v2170_v54 = vsel %vm2119_vm13, %v2161_v16, %v2169_v11  ;;  %v2545_v26 = vrot.slane %v7141_v63, 3  ;;  %v2541_v27 = vrot.slane %v2536_v23, 3  ;;  %v2547_v63 = vrot.slane %v2538_v37, 3 }
 0x1ef   : > { %v2187_v18 = vsel %vm2119_vm13, %v2178_v17, %v2186_v12 }
 0x1f0   : > { %2759 = vmatpush.bf16.msrb.mxu0 %v6299_v32  ;;  %2777 = vmatpush.bf16.msrb.mxu1 %v6307_v3  ;;  %v2543_v32 = vsel %vm2540_vm14, %v2541_v27, %v2542_v36  ;;  %v2546_v3 = vsel %vm2540_vm14, %v2544_v29, %v2545_v26  ;;  %v2549_v33 = vsel %vm2540_vm14, %v2547_v63, %v2548_v47 }
 0x1f2   : > { %2794 = vmatpush.bf16.msrb.mxu2 %v6316_v43  ;;  %2812 = vmatpush.bf16.msrb.mxu3 %v6324_v44 }
 0x1f4   : > { %2760 = vmatpush.bf16.msrb.mxu0 %v6298_v57  ;;  %2778 = vmatpush.bf16.msrb.mxu1 %v6306_v58 }
 0x1f6   : > { %2795 = vmatpush.bf16.msrb.mxu2 %v6315_v4  ;;  %2813 = vmatpush.bf16.msrb.mxu3 %v6323_v5 }
 0x1f7   : > { %2396 = vmatmul.bf16.vlgmr.msra.gmra.mxu0 %v2136_v61  ;;  %2414 = vmatmul.bf16.vlgmr.msra.gmra.mxu1 %v2153_v7 }
 0x1fa   : > { %2796 = vmatpush.bf16.msrb.mxu2 %v6314_v13  ;;  %2814 = vmatpush.bf16.msrb.mxu3 %v6322_v15 }
 0x1fd   : > { %2432 = vmatmul.bf16.vlgmr.msra.gmra.mxu2 %v2170_v54  ;;  %2450 = vmatmul.bf16.vlgmr.msra.gmra.mxu3 %v2187_v18 }
 0x207   : > { %2401 = vmatmul.bf16.gmra.mxu0 %v2135_v45  ;;  %2419 = vmatmul.bf16.gmra.mxu1 %v2152_v48 }
 0x20d   : > { %2437 = vmatmul.bf16.gmra.mxu2 %v2169_v11  ;;  %2455 = vmatmul.bf16.gmra.mxu3 %v2186_v12 }
 0x217   : > { %2761 = vmatmul.bf16.vlgmr.msrb.gmra.mxu0 %v2543_v32  ;;  %2779 = vmatmul.bf16.vlgmr.msrb.gmra.mxu1 %v2546_v3 }
 0x21d   : > { %2797 = vmatmul.bf16.vlgmr.msrb.gmra.mxu2 %v2549_v33  ;;  %2815 = vmatmul.bf16.vlgmr.msrb.gmra.mxu3 %v2552_v34 }
 0x227   : > { %2766 = vmatmul.bf16.gmra.mxu0 %v2542_v36  ;;  %2784 = vmatmul.bf16.gmra.mxu1 %v2545_v26 }
 0x22d   : > { %2802 = vmatmul.bf16.gmra.mxu2 %v2548_v47  ;;  %2820 = vmatmul.bf16.gmra.mxu3 %v2551_v62 }
 0x234   : > { %v1669_v2 = vpop.f32.mrf.mxu0  ;;  %v1687_v9 = vpop.f32.mrf.mxu1 }
 0x235   : > { %v1688_v14 = vadd.f32 %v1687_v9, %v1669_v2 }
 0x23c   : > { %v1671_v38 = vpop.f32.mrf.mxu0  ;;  %v1689_v39 = vpop.f32.mrf.mxu1 }
 0x23d   : > { %v1690_v59 = vadd.f32 %v1689_v39, %v1671_v38 }
 0x240   : > { %v1705_v22 = vpop.f32.mrf.mxu2  ;;  %v1723_v40 = vpop.f32.mrf.mxu3 }
 0x241   : > { %v1706_v24 = vadd.f32 %v1705_v22, %v1688_v14 }
 0x243   : > { %v1724_v41 = vadd.f32 %v1723_v40, %v1706_v24 }
 0x244   : > { %v1674_v42 = vpop.f32.mrf.mxu0  ;;  %v1692_v43 = vpop.f32.mrf.mxu1 }
 0x245   : > { %v1693_v44 = vadd.f32 %v1692_v43, %v1674_v42 }
 0x248   : > { %v1707_v45 = vpop.f32.mrf.mxu2  ;;  %v1725_v46 = vpop.f32.mrf.mxu3 }
 0x249   : > { %v1708_v60 = vadd.f32 %v1707_v45, %v1690_v59 }
 0x24b   : > { %v1726_v61 = vadd.f32 %v1725_v46, %v1708_v60 }
 0x24c   : > { %v1676_v48 = vpop.f32.mrf.mxu0  ;;  %v1694_v49 = vpop.f32.mrf.mxu1 }
 0x250   : > { %v1710_v50 = vpop.f32.mrf.mxu2  ;;  %v1728_v51 = vpop.f32.mrf.mxu3 }
 0x251   : > { %v1711_v57 = vadd.f32 %v1710_v50, %v1693_v44 }
 0x253   : > { %v1729_v58 = vadd.f32 %v1728_v51, %v1711_v57 }
 0x254   : > { %v1951_v0 = vpop.f32.mrf.mxu0  ;;  %v1969_v53 = vpop.f32.mrf.mxu1 }
 0x255   : > { %v1952_v55 = vadd.f32 %v1951_v0, %v1724_v41 }
 0x257   : > { %v1970_v1 = vadd.f32 %v1969_v53, %v1952_v55 }
 0x258   : > { %v1712_v4 = vpop.f32.mrf.mxu2  ;;  %v1730_v5 = vpop.f32.mrf.mxu3 }
 0x25c   : > { %v1953_v6 = vpop.f32.mrf.mxu0  ;;  %v1971_v7 = vpop.f32.mrf.mxu1 }
 0x25d   : > { %v1954_v8 = vadd.f32 %v1953_v6, %v1726_v61 }
 0x25f   : > { %v1972_v56 = vadd.f32 %v1971_v7, %v1954_v8 }
 0x260   : > { %v1987_v10 = vpop.f32.mrf.mxu2  ;;  %v2005_v11 = vpop.f32.mrf.mxu3 }
 0x261   : > { %v1988_v12 = vadd.f32 %v1987_v10, %v1970_v1  ;;  %v6485_v1 = vld [vmem:[%s7682_s5] ss:$0 sm:$0xff] }
 0x263   : > { %v2006_v13 = vadd.f32 %v2005_v11, %v1988_v12 }
 0x264   : > { %v1956_v15 = vpop.f32.mrf.mxu0  ;;  %v1974_v16 = vpop.f32.mrf.mxu1 }
 0x265   : > { %v1957_v17 = vadd.f32 %v1956_v15, %v1729_v58 }
 0x267   : > { %v1975_v54 = vadd.f32 %v1974_v16, %v1957_v17 }
 0x268   : > { %v1989_v18 = vpop.f32.mrf.mxu2  ;;  %v2007_v19 = vpop.f32.mrf.mxu3 }
 0x269   : > { %v1990_v20 = vadd.f32 %v1989_v18, %v1972_v56 }
 0x26b   : > { %v2008_v21 = vadd.f32 %v2007_v19, %v1990_v20 }
 0x26c   : > { %v1958_v23 = vpop.f32.mrf.mxu0  ;;  %v1976_v25 = vpop.f32.mrf.mxu1 }
 0x270   : > { %v1992_v35 = vpop.f32.mrf.mxu2  ;;  %v2010_v36 = vpop.f32.mrf.mxu3 }
 0x271   : > { %v1993_v26 = vadd.f32 %v1992_v35, %v1975_v54 }
 0x273   : > { %v2011_v27 = vadd.f32 %v2010_v36, %v1993_v26 }
 0x274   : > { %v2397_v29 = vpop.f32.mrf.mxu0  ;;  %v2415_v30 = vpop.f32.mrf.mxu1 }
 0x275   : > { %v2416_v24 = vadd.f32 %v2415_v30, %v2397_v29 }
 0x278   : > { %v1994_v31 = vpop.f32.mrf.mxu2  ;;  %v2012_v32 = vpop.f32.mrf.mxu3 }
 0x27c   : > { %v2399_v3 = vpop.f32.mrf.mxu0  ;;  %v2417_v37 = vpop.f32.mrf.mxu1 }
 0x27d   : > { %v2418_v48 = vadd.f32 %v2417_v37, %v2399_v3 }
 0x280   : > { %v2433_v28 = vpop.f32.mrf.mxu2  ;;  %v2451_v47 = vpop.f32.mrf.mxu3 }
 0x281   : > { %v2434_v43 = vadd.f32 %v2433_v28, %v2416_v24  ;;  %v6379_v24 = vld [vmem:[%s7680_s3 + $0x168] sm:$0xff] }
 0x283   : > { %v2452_v49 = vadd.f32 %v2451_v47, %v2434_v43  ;;  %v6370_v43 = vld [vmem:[%s7680_s3 + $0x120] sm:$0xff] }
 0x284   : > { %v2402_v62 = vpop.f32.mrf.mxu0  ;;  %v2420_v63 = vpop.f32.mrf.mxu1 }
 0x285   : > { %v2460_v53 = vadd.f32 %v2452_v49, %v2006_v13  ;;  %v2421_v61 = vadd.f32 %v2420_v63, %v2402_v62  ;;  %v6381_v62 = vld [vmem:[%s7680_s3 + $0x178] sm:$0xff]  ;;  %v6330_v63 = vld [vmem:[%s7685_s8] sm:$0xff] }
 0x286   : > { %v6377_v49 = vld [vmem:[%s7680_s3 + $0x158] sm:$0xff] }
 0x288   : > { %v2435_v52 = vpop.f32.mrf.mxu2  ;;  %v2453_v33 = vpop.f32.mrf.mxu3 }
 0x289   : > { %v2436_v51 = vadd.f32 %v2435_v52, %v2418_v48  ;;  %v6331_v52 = vld [vmem:[%s7685_s8 + $0x8] sm:$0xff]  ;;  %v6369_v48 = vld [vmem:[%s7680_s3 + $0x118] sm:$0xff] }
 0x28b   : > { %v2454_v59 = vadd.f32 %v2453_v33, %v2436_v51  ;;  %v6332_v33 = vld [vmem:[%s7685_s8 + $0x10] sm:$0xff]  ;;  %v6393_v51 = vld [vmem:[%s7680_s3 + $0x1d8] sm:$0xff] }
 0x28c   : > { %v2404_v34 = vpop.f32.mrf.mxu0  ;;  %v2422_v2 = vpop.f32.mrf.mxu1 }
 0x28d   : > { %v2461_v7 = vadd.f32 %v2454_v59, %v2008_v21  ;;  %v6333_v34 = vld [vmem:[%s7685_s8 + $0x18] sm:$0xff]  ;;  %v6367_v59 = vld [vmem:[%s7680_s3 + $0x108] sm:$0xff] }
 0x28e   : > { %v6389_v2 = vld [vmem:[%s7680_s3 + $0x1b8] sm:$0xff] }
 0x290   : > { %v2438_v9 = vpop.f32.mrf.mxu2  ;;  %v2456_v14 = vpop.f32.mrf.mxu3 }
 0x291   : > { %v2439_v8 = vadd.f32 %v2438_v9, %v2421_v61  ;;  %v6397_v9 = vld [vmem:[%s7680_s3 + $0x1f8] sm:$0xff] }
 0x292   : > { %v6341_v61 = vld [vmem:[%s7680_s3 + $0x38] sm:$0xff] }
 0x293   : > { %v2457_v16 = vadd.f32 %v2456_v14, %v2439_v8  ;;  %v6372_v14 = vld [vmem:[%s7680_s3 + $0x130] sm:$0xff]  ;;  %v6390_v8 = vld [vmem:[%s7680_s3 + $0x1c0] sm:$0xff] }
 0x294   : > { %v2762_v38 = vpop.f32.mrf.mxu0  ;;  %v2780_v39 = vpop.f32.mrf.mxu1 }
 0x295   : > { %v2781_v44 = vadd.f32 %v2780_v39, %v2762_v38  ;;  %v2462_v25 = vadd.f32 %v2457_v16, %v2011_v27  ;;  %v6373_v27 = vld [vmem:[%s7680_s3 + $0x138] sm:$0xff]  ;;  %v6380_v38 = vld [vmem:[%s7680_s3 + $0x170] sm:$0xff]  ;;  %v6347_v16 = vld [vmem:[%s7680_s3 + $0x68] sm:$0xff] }
 0x296   : > { %v6388_v39 = vld [vmem:[%s7680_s3 + $0x1b0] sm:$0xff] }
 0x298   : > { %v2440_v22 = vpop.f32.mrf.mxu2  ;;  %v2458_v40 = vpop.f32.mrf.mxu3 }
 0x299   : > { %v6396_v22 = vld [vmem:[%s7680_s3 + $0x1f0] sm:$0xff]  ;;  %v6371_v40 = vld [vmem:[%s7680_s3 + $0x128] sm:$0xff] }
 0x29c   : > { %v2764_v41 = vpop.f32.mrf.mxu0  ;;  %v2782_v42 = vpop.f32.mrf.mxu1 }
 0x29d   : > { %v2783_v55 = vadd.f32 %v2782_v42, %v2764_v41  ;;  %v6387_v41 = vld [vmem:[%s7680_s3 + $0x1a8] sm:$0xff] }
 0x29e   : > { %v6395_v42 = vld [vmem:[%s7680_s3 + $0x1e8] sm:$0xff] }
 0x2a0   : > { %v2798_v45 = vpop.f32.mrf.mxu2  ;;  %v2816_v46 = vpop.f32.mrf.mxu3 }
 0x2a1   : > { %v2799_v50 = vadd.f32 %v2798_v45, %v2781_v44  ;;  %v6378_v44 = vld [vmem:[%s7680_s3 + $0x160] sm:$0xff] }
 0x2a2   : > { %v6386_v45 = vld [vmem:[%s7680_s3 + $0x1a0] sm:$0xff] }
 0x2a3   : > { %v2817_v57 = vadd.f32 %v2816_v46, %v2799_v50  ;;  %v6394_v46 = vld [vmem:[%s7680_s3 + $0x1e0] sm:$0xff]  ;;  %v6385_v50 = vld [vmem:[%s7680_s3 + $0x198] sm:$0xff] }
 0x2a4   : > { %v2767_v58 = vpop.f32.mrf.mxu0  ;;  %v2785_v0 = vpop.f32.mrf.mxu1 }
 0x2a5   : > { %v2825_v60 = vadd.f32 %v2817_v57, %v2460_v53  ;;  %v2786_v17 = vadd.f32 %v2785_v0, %v2767_v58  ;;  %v6368_v57 = vld [vmem:[%s7680_s3 + $0x110] sm:$0xff] }
 0x2a6   : > { %v6376_v58 = vld [vmem:[%s7680_s3 + $0x150] sm:$0xff] }
 0x2a7   : > { %v2832_v56 = vadd.f32 %v6485_v1, %v2825_v60  ;;  %v6384_v0 = vld [vmem:[%s7680_s3 + $0x190] sm:$0xff]  ;;  %v6383_v60 = vld [vmem:[%s7680_s3 + $0x188] sm:$0xff] }
 0x2a8   : > { %v2800_v4 = vpop.f32.mrf.mxu2  ;;  %v2818_v5 = vpop.f32.mrf.mxu3  ;;  %v6392_v53 = vld [vmem:[%s7680_s3 + $0x1d0] sm:$0xff] }
 0x2a9   : > { %v2801_v6 = vadd.f32 %v2800_v4, %v2783_v55  ;;  %v2838_v13 = vmul.f32 0.1, %v2832_v56  ;;  %vm2835_vm15 = vcmp.ge.f32.partialorder %v2832_v56, 0.0  ;;  %v6375_v55 = vld [vmem:[%s7680_s3 + $0x148] sm:$0xff]  ;;  %v6366_v4 = vld [vmem:[%s7680_s3 + $0x100] sm:$0xff] }
 0x2ab   : > { %v2819_v10 = vadd.f32 %v2818_v5, %v2801_v6  ;;  %v2841_v36 = vsel %vm2835_vm15, %v2832_v56, %v2838_v13  ;;  %v6374_v5 = vld [vmem:[%s7680_s3 + $0x140] sm:$0xff]  ;;  %v6349_v6 = vld [vmem:[%s7680_s3 + $0x78] sm:$0xff]  ;;  %v6356_v13 = vld [vmem:[%s7680_s3 + $0xb0] sm:$0xff] }
 0x2ac   : > { %v2769_v11 = vpop.f32.mrf.mxu0  ;;  %v2787_v12 = vpop.f32.mrf.mxu1  ;;  %v6357_v56 = vld [vmem:[%s7680_s3 + $0xb8] sm:$0xff] }
 0x2ad   : > { %v2826_v15 = vadd.f32 %v2819_v10, %v2461_v7  ;;  %v6382_v7 = vld [vmem:[%s7680_s3 + $0x180] sm:$0xff]  ;;  %v6365_v10 = vld [vmem:[%s7680_s3 + $0xf8] sm:$0xff]  ;;  %v6340_v11 = vld [vmem:[%s7680_s3 + $0x30] sm:$0xff] }
 0x2ae   : > { %v6348_v12 = vld [vmem:[%s7680_s3 + $0x70] sm:$0xff] }
 0x2af   : > { %v2833_v54 = vadd.f32 %v6485_v1, %v2826_v15  ;;  %v6339_v15 = vld [vmem:[%s7680_s3 + $0x28] sm:$0xff] }
 0x2b0   : > { %v2803_v18 = vpop.f32.mrf.mxu2  ;;  %v2821_v19 = vpop.f32.mrf.mxu3 }
 0x2b1   : > { %vm2836_vm0 = vcmp.ge.f32.partialorder %v2833_v54, 0.0  ;;  %v2839_v20 = vmul.f32 0.1, %v2833_v54  ;;  %v2804_v23 = vadd.f32 %v2803_v18, %v2786_v17  ;;  %v6364_v17 = vld [vmem:[%s7680_s3 + $0xf0] sm:$0xff]  ;;  %v6346_v18 = vld [vmem:[%s7680_s3 + $0x60] sm:$0xff] }
 0x2b3   : > { %v2822_v35 = vadd.f32 %v2821_v19, %v2804_v23  ;;  %v2842_v21 = vsel %vm2836_vm0, %v2833_v54, %v2839_v20  ;;  %v6338_v54 = vld [vmem:[%s7680_s3 + $0x20] sm:$0xff]  ;;  %v6355_v19 = vld [vmem:[%s7680_s3 + $0xa8] sm:$0xff]  ;;  %v6337_v23 = vld [vmem:[%s7680_s3 + $0x18] sm:$0xff] }
 0x2b4   : > { %v2844_v26 = vpack.c.bf16 %v2842_v21, %v2841_v36  ;;  %v6363_v20 = vld [vmem:[%s7680_s3 + $0xe8] sm:$0xff]  ;;  %v6362_v36 = vld [vmem:[%s7680_s3 + $0xe0] sm:$0xff]  ;;  %v6336_v21 = vld [vmem:[%s7680_s3 + $0x10] sm:$0xff] }
 0x2b5   : > { %v2827_v29 = vadd.f32 %v2822_v35, %v2462_v25  ;;  %v6345_v25 = vld [vmem:[%s7680_s3 + $0x58] sm:$0xff]  ;;  %v6354_v35 = vld [vmem:[%s7680_s3 + $0xa0] sm:$0xff] }
 0x2b7   : > { %v2834_v30 = vadd.f32 %v6485_v1, %v2827_v29  ;;  %v6391_v1 = vld [vmem:[%s7680_s3 + $0x1c8] sm:$0xff]  ;;  %v6353_v29 = vld [vmem:[%s7680_s3 + $0x98] sm:$0xff] }
 0x2b8   : > { %v2805_v31 = vpop.f32.mrf.mxu2  ;;  %v2823_v32 = vpop.f32.mrf.mxu3 }
 0x2b9   : > { %v2840_v3 = vmul.f32 0.1, %v2834_v30  ;;  %vm2837_vm1 = vcmp.ge.f32.partialorder %v2834_v30, 0.0  ;;  %v6335_v31 = vld [vmem:[%s7680_s3 + $0x8] sm:$0xff] }
 0x2ba   : > { %v6343_v32 = vld [vmem:[%s7680_s3 + $0x48] sm:$0xff] }
 0x2bb   : > { %v2843_v37 = vsel %vm2837_vm1, %v2834_v30, %v2840_v3  ;;  %v6361_v30 = vld [vmem:[%s7680_s3 + $0xd8] sm:$0xff]  ;;  %v6352_v3 = vld [vmem:[%s7680_s3 + $0x90] sm:$0xff] }
 0x2bc   : > { %v2845_v28 = vpack.c.bf16 %v2843_v37, %v2843_v37  ;;  %v6360_v37 = vld [vmem:[%s7680_s3 + $0xd0] sm:$0xff] }
 0x2be   : > { %v2859_v47 = vsel %vm2857_vm2, %v2845_v28, 0  ;;  %v6334_v28 = vld [vmem:[%s7680_s3] sm:$0xff] }
 0x2bf   : > { %2867 = vmatpush.bf16.msra.mxu0 %v2859_v47  ;;  %2896 = vmatpush.bf16.msra.mxu1 %v2859_v47 }
 0x2c0   : > { %2925 = vmatpush.bf16.msra.mxu2 %v2859_v47  ;;  %2954 = vmatpush.bf16.msra.mxu3 %v2859_v47  ;;  %v6342_v47 = vld [vmem:[%s7680_s3 + $0x40] sm:$0xff] }
 0x2c3   : > { %2868 = vmatpush.bf16.msra.mxu0 %v2844_v26  ;;  %2897 = vmatpush.bf16.msra.mxu1 %v2844_v26 }
 0x2c4   : > { %2926 = vmatpush.bf16.msra.mxu2 %v2844_v26  ;;  %2955 = vmatpush.bf16.msra.mxu3 %v2844_v26  ;;  %v6344_v26 = vld [vmem:[%s7680_s3 + $0x50] sm:$0xff] }
 0x2c6   : > { %5418 = vmatmul.msk.bf16.vlgmr.msra.gmra.mxu0 %vm2853_vm3, %v6330_v63  ;;  %5425 = vmatmul.msk.bf16.vlgmr.msra.gmra.mxu1 %vm2853_vm3, %v6331_v52  ;;  %v6350_v63 = vld [vmem:[%s7680_s3 + $0x80] sm:$0xff] }
 0x2c7   : > { %3333 = vmatpush.bf16.msrb.mxu0 %v6373_v27  ;;  %3346 = vmatpush.bf16.msrb.mxu1 %v6381_v62  ;;  %v6351_v27 = vld [vmem:[%s7680_s3 + $0x88] sm:$0xff]  ;;  %v6358_v52 = vld [vmem:[%s7680_s3 + $0xc0] sm:$0xff] }
 0x2c8   : > { %5432 = vmatmul.msk.bf16.vlgmr.msra.gmra.mxu2 %vm2853_vm3, %v6332_v33  ;;  %5439 = vmatmul.msk.bf16.vlgmr.msra.gmra.mxu3 %vm2853_vm3, %v6333_v34  ;;  %v6359_v62 = vld [vmem:[%s7680_s3 + $0xc8] sm:$0xff] }
 0x2c9   : > { %3359 = vmatpush.bf16.msrb.mxu2 %v6389_v2  ;;  %3372 = vmatpush.bf16.msrb.mxu3 %v6397_v9 }
 0x2cb   : > { %3334 = vmatpush.bf16.msrb.mxu0 %v6372_v14  ;;  %3347 = vmatpush.bf16.msrb.mxu1 %v6380_v38 }
 0x2cd   : > { %3360 = vmatpush.bf16.msrb.mxu2 %v6388_v39  ;;  %3373 = vmatpush.bf16.msrb.mxu3 %v6396_v22 }
 0x2cf   : > { %3335 = vmatpush.bf16.msrb.mxu0 %v6371_v40  ;;  %3348 = vmatpush.bf16.msrb.mxu1 %v6379_v24 }
 0x2d1   : > { %3361 = vmatpush.bf16.msrb.mxu2 %v6387_v41  ;;  %3374 = vmatpush.bf16.msrb.mxu3 %v6395_v42 }
 0x2d3   : > { %3336 = vmatpush.bf16.msrb.mxu0 %v6370_v43  ;;  %3349 = vmatpush.bf16.msrb.mxu1 %v6378_v44 }
 0x2d5   : > { %3362 = vmatpush.bf16.msrb.mxu2 %v6386_v45  ;;  %3375 = vmatpush.bf16.msrb.mxu3 %v6394_v46 }
 0x2d7   : > { %3337 = vmatpush.bf16.msrb.mxu0 %v6369_v48  ;;  %3350 = vmatpush.bf16.msrb.mxu1 %v6377_v49 }
 0x2d9   : > { %3363 = vmatpush.bf16.msrb.mxu2 %v6385_v50  ;;  %3376 = vmatpush.bf16.msrb.mxu3 %v6393_v51 }
 0x2db   : > { %3338 = vmatpush.bf16.msrb.mxu0 %v6368_v57  ;;  %3351 = vmatpush.bf16.msrb.mxu1 %v6376_v58 }
 0x2dd   : > { %3364 = vmatpush.bf16.msrb.mxu2 %v6384_v0  ;;  %3377 = vmatpush.bf16.msrb.mxu3 %v6392_v53 }
 0x2df   : > { %3339 = vmatpush.bf16.msrb.mxu0 %v6367_v59  ;;  %3352 = vmatpush.bf16.msrb.mxu1 %v6375_v55 }
 0x2e1   : > { %3365 = vmatpush.bf16.msrb.mxu2 %v6383_v60  ;;  %3378 = vmatpush.bf16.msrb.mxu3 %v6391_v1 }
 0x2e3   : > { %3340 = vmatpush.bf16.msrb.mxu0 %v6366_v4  ;;  %3353 = vmatpush.bf16.msrb.mxu1 %v6374_v5  ;;  %v6405_v4 = vld [vmem:[%s7680_s3 + $0x238] sm:$0xff] }
 0x2e4   : > { %v6413_v5 = vld [vmem:[%s7680_s3 + $0x278] sm:$0xff] }
 0x2e5   : > { %3366 = vmatpush.bf16.msrb.mxu2 %v6382_v7  ;;  %3379 = vmatpush.bf16.msrb.mxu3 %v6390_v8 }
 0x2e7   : > { %3591 = vmatpush.bf16.msra.mxu0 %v6341_v61  ;;  %3604 = vmatpush.bf16.msra.mxu1 %v6349_v6 }
 0x2e9   : > { %3617 = vmatpush.bf16.msra.mxu2 %v6357_v56  ;;  %3630 = vmatpush.bf16.msra.mxu3 %v6365_v10 }
 0x2eb   : > { %3592 = vmatpush.bf16.msra.mxu0 %v6340_v11  ;;  %3605 = vmatpush.bf16.msra.mxu1 %v6348_v12  ;;  %v6404_v11 = vld [vmem:[%s7680_s3 + $0x230] sm:$0xff] }
 0x2ec   : > { %v6412_v12 = vld [vmem:[%s7680_s3 + $0x270] sm:$0xff] }
 0x2ed   : > { %3618 = vmatpush.bf16.msra.mxu2 %v6356_v13  ;;  %3631 = vmatpush.bf16.msra.mxu3 %v6364_v17 }
 0x2ef   : > { %3593 = vmatpush.bf16.msra.mxu0 %v6339_v15  ;;  %3606 = vmatpush.bf16.msra.mxu1 %v6347_v16 }
 0x2f1   : > { %3619 = vmatpush.bf16.msra.mxu2 %v6355_v19  ;;  %3632 = vmatpush.bf16.msra.mxu3 %v6363_v20  ;;  %v6421_v19 = vld [vmem:[%s7680_s3 + $0x2b8] sm:$0xff] }
 0x2f2   : > { %v6429_v20 = vld [vmem:[%s7680_s3 + $0x2f8] sm:$0xff] }
 0x2f3   : > { %3594 = vmatpush.bf16.msra.mxu0 %v6338_v54  ;;  %3607 = vmatpush.bf16.msra.mxu1 %v6346_v18 }
 0x2f5   : > { %3620 = vmatpush.bf16.msra.mxu2 %v6354_v35  ;;  %3633 = vmatpush.bf16.msra.mxu3 %v6362_v36  ;;  %v6403_v35 = vld [vmem:[%s7680_s3 + $0x228] sm:$0xff] }
 0x2f6   : > { %v6411_v36 = vld [vmem:[%s7680_s3 + $0x268] sm:$0xff] }
 0x2f7   : > { %3595 = vmatpush.bf16.msra.mxu0 %v6337_v23  ;;  %3608 = vmatpush.bf16.msra.mxu1 %v6345_v25 }
 0x2f9   : > { %3621 = vmatpush.bf16.msra.mxu2 %v6353_v29  ;;  %3634 = vmatpush.bf16.msra.mxu3 %v6361_v30  ;;  %v6402_v29 = vld [vmem:[%s7680_s3 + $0x220] sm:$0xff] }
 0x2fa   : > { %v6410_v30 = vld [vmem:[%s7680_s3 + $0x260] sm:$0xff] }
 0x2fb   : > { %3596 = vmatpush.bf16.msra.mxu0 %v6336_v21  ;;  %3609 = vmatpush.bf16.msra.mxu1 %v6344_v26  ;;  %v6420_v21 = vld [vmem:[%s7680_s3 + $0x2b0] sm:$0xff] }
 0x2fc   : > { %v6428_v26 = vld [vmem:[%s7680_s3 + $0x2f0] sm:$0xff] }
 0x2fd   : > { %3622 = vmatpush.bf16.msra.mxu2 %v6352_v3  ;;  %3635 = vmatpush.bf16.msra.mxu3 %v6360_v37  ;;  %v6427_v3 = vld [vmem:[%s7680_s3 + $0x2e8] sm:$0xff] }
 0x2ff   : > { %3597 = vmatpush.bf16.msra.mxu0 %v6335_v31  ;;  %3610 = vmatpush.bf16.msra.mxu1 %v6343_v32  ;;  %v6419_v32 = vld [vmem:[%s7680_s3 + $0x2a8] sm:$0xff] }
 0x301   : > { %3623 = vmatpush.bf16.msra.mxu2 %v6351_v27  ;;  %3636 = vmatpush.bf16.msra.mxu3 %v6359_v62  ;;  %v6401_v27 = vld [vmem:[%s7680_s3 + $0x218] sm:$0xff] }
 0x302   : > { %v6409_v62 = vld [vmem:[%s7680_s3 + $0x258] sm:$0xff] }
 0x303   : > { %3598 = vmatpush.bf16.msra.mxu0 %v6334_v28  ;;  %3611 = vmatpush.bf16.msra.mxu1 %v6342_v47 }
 0x305   : > { %3624 = vmatpush.bf16.msra.mxu2 %v6350_v63  ;;  %3637 = vmatpush.bf16.msra.mxu3 %v6358_v52 }
 0x343   : > { %v2870_v33 = vpop.f32.mrf.mxu0  ;;  %v2899_v34 = vpop.f32.mrf.mxu1 }
 0x344   : > { %v2875_v2 = vpack.c.bf16 %v2870_v33, %v2870_v33  ;;  %v2904_v9 = vpack.c.bf16 %v2899_v34, %v2899_v34 }
 0x346   : > { %2877 = vst [vmem:[#allocation3] sm:$0xf] %v2875_v2  ;;  %v6418_v2 = vld [vmem:[%s7680_s3 + $0x2a0] sm:$0xff] }
 0x347   : > { %2906 = vst [vmem:[#allocation3 + $0x4] sm:$0xf] %v2904_v9  ;;  %v6426_v9 = vld [vmem:[%s7680_s3 + $0x2e0] sm:$0xff] }
 0x34b   : > { %v2928_v14 = vpop.f32.mrf.mxu2  ;;  %v2957_v38 = vpop.f32.mrf.mxu3 }
 0x34c   : > { %v2933_v39 = vpack.c.bf16 %v2928_v14, %v2928_v14  ;;  %v2962_v22 = vpack.c.bf16 %v2957_v38, %v2957_v38  ;;  %v2872_v40 = vpop.f32.mrf.mxu0  ;;  %v2901_v24 = vpop.f32.mrf.mxu1 }
 0x34d   : > { %v2876_v41 = vpack.c.bf16 %v2872_v40, %v2872_v40  ;;  %v2905_v42 = vpack.c.bf16 %v2901_v24, %v2901_v24  ;;  %v6400_v40 = vld [vmem:[%s7680_s3 + $0x210] sm:$0xff] }
 0x34e   : > { %2935 = vst [vmem:[#allocation3 + $0x8] sm:$0xf] %v2933_v39  ;;  %v3032_v43 = vld [vmem:[#allocation3] sm:$0xff]  ;;  %v6408_v24 = vld [vmem:[%s7680_s3 + $0x250] sm:$0xff] }
 0x34f   : > { %2964 = vst [vmem:[#allocation3 + $0xc] sm:$0xf] %v2962_v22  ;;  %v3101_v44 = vunpack.c.l.b16 %v3032_v43  ;;  %v3102_v45 = vunpack.c.h.b16 %v3032_v43  ;;  %v2966_v31 = vld [vmem:[#allocation3] sm:$0x77] }
 0x350   : > { %2878 = vst [vmem:[#allocation3 + $0x10] sm:$0xf] %v2876_v41  ;;  %v3387_v37 = vunpack.c.l.b16 %v2966_v31  ;;  %v3388_v28 = vunpack.c.h.b16 %v2966_v31  ;;  %v3643_v47 = vld [vmem:[#allocation3] sm:$0xee]  ;;  %v6453_v31 = vld [vmem:[%s7680_s3 + $0x3b8] sm:$0xff] }
 0x351   : > { %2907 = vst [vmem:[#allocation3 + $0x14] sm:$0xf] %v2905_v42  ;;  %v3105_v46 = vpack.c.b16 %v3101_v44, %v3101_v44  ;;  %v3106_v48 = vpack.c.b16 %v3102_v45, %v3102_v45  ;;  %v3716_v33 = vunpack.c.l.b16 %v3643_v47  ;;  %v3717_v34 = vunpack.c.h.b16 %v3643_v47  ;;  %v6417_v44 = vld [vmem:[%s7680_s3 + $0x298] sm:$0xff] }
 0x352   : > { %v3391_v14 = vpack.c.b16 %v3387_v37, %v3387_v37  ;;  %v3392_v38 = vpack.c.b16 %v3388_v28, %v3388_v28  ;;  %v6425_v45 = vld [vmem:[%s7680_s3 + $0x2d8] sm:$0xff] }
 0x353   : > { %v2930_v49 = vpop.f32.mrf.mxu2  ;;  %v2959_v50 = vpop.f32.mrf.mxu3  ;;  %v3110_v51 = vshrl.u32 %v3105_v46, 16  ;;  %v3112_v57 = vshll.u32 %v3105_v46, 16  ;;  %v3117_v58 = vshrl.u32 %v3106_v48, 16  ;;  %v3119_v0 = vshll.u32 %v3106_v48, 16 }
 0x354   : > { %v2934_v53 = vpack.c.bf16 %v2930_v49, %v2930_v49  ;;  %v2963_v59 = vpack.c.bf16 %v2959_v50, %v2959_v50  ;;  %v6399_v50 = vld [vmem:[%s7680_s3 + $0x208] sm:$0xff] }
 0x355   : > { %v3114_v55 = vrot.slane %v3112_v57, 1  ;;  %v3121_v60 = vrot.slane %v3119_v0, 1 }
 0x356   : > { %v3033_v1 = vld [vmem:[#allocation3 + $0x8] sm:$0xff]  ;;  %2936 = vst [vmem:[#allocation3 + $0x18] sm:$0xf] %v2934_v53 }
 0x357   : > { %v3103_v61 = vunpack.c.l.b16 %v3033_v1  ;;  %v3104_v6 = vunpack.c.h.b16 %v3033_v1  ;;  %v3115_v7 = vor.u32 %v3114_v55, %v3110_v51  ;;  %v3122_v8 = vor.u32 %v3121_v60, %v3117_v58  ;;  %2965 = vst [vmem:[#allocation3 + $0x1c] sm:$0xf] %v2963_v59  ;;  %v2967_v52 = vld [vmem:[#allocation3 + $0x8] sm:$0x77]  ;;  %v6416_v60 = vld [vmem:[%s7680_s3 + $0x290] sm:$0xff] }
 0x358   : > { %v7496_v63 = vld [vmem:[#allocation3 + $0x10] sm:$0x11]  ;;  %v3389_v41 = vunpack.c.l.b16 %v2967_v52  ;;  %v3390_v42 = vunpack.c.h.b16 %v2967_v52  ;;  %v3644_v49 = vld [vmem:[#allocation3 + $0x8] sm:$0xee] }
 0x359   : > { %v3107_v56 = vpack.c.b16 %v3103_v61, %v3103_v61  ;;  %v3108_v10 = vpack.c.b16 %v3104_v6, %v3104_v6  ;;  %3341 = vmatmul.bf16.vlgmr.msrb.gmra.mxu0 %v3115_v7  ;;  %3354 = vmatmul.bf16.vlgmr.msrb.gmra.mxu1 %v3122_v8  ;;  %v3720_v39 = vunpack.c.l.b16 %v7496_v63  ;;  %v3721_v22 = vunpack.c.h.b16 %v7496_v63  ;;  %v6407_v51 = vld [vmem:[%s7680_s3 + $0x248] sm:$0xff]  ;;  %v6424_v1 = vld [vmem:[%s7680_s3 + $0x2d0] sm:$0xff]  ;;  %v6398_v7 = vld [vmem:[%s7680_s3 + $0x200] sm:$0xff] }
 0x35a   : > { %3956 = vmatpush.bf16.msrb.mxu0 %v6405_v4  ;;  %3969 = vmatpush.bf16.msrb.mxu1 %v6413_v5  ;;  %v3393_v57 = vpack.c.b16 %v3389_v41, %v3389_v41  ;;  %v3394_v58 = vpack.c.b16 %v3390_v42, %v3390_v42  ;;  %v3718_v59 = vunpack.c.l.b16 %v3644_v49  ;;  %v3719_v55 = vunpack.c.h.b16 %v3644_v49  ;;  %v6406_v8 = vld [vmem:[%s7680_s3 + $0x240] sm:$0xff]  ;;  %v6452_v52 = vld [vmem:[%s7680_s3 + $0x3b0] sm:$0xff]  ;;  %v6441_v41 = vld [vmem:[%s7680_s3 + $0x358] sm:$0xff] }
 0x35b   : > { %v3126_v15 = vshll.u32 %v3107_v56, 16  ;;  %v3133_v16 = vshll.u32 %v3108_v10, 16  ;;  %v3124_v13 = vshrl.u32 %v3107_v56, 16  ;;  %v3131_v54 = vshrl.u32 %v3108_v10, 16  ;;  %v6450_v42 = vld [vmem:[%s7680_s3 + $0x3a0] sm:$0xff]  ;;  %v6457_v49 = vld [vmem:[%s7680_s3 + $0x3d8] sm:$0xff] }
 0x35c   : > { %v3724_v46 = vpack.c.b16 %v3720_v39, %v3716_v33  ;;  %v3725_v48 = vpack.c.b16 %v3721_v22, %v3717_v34  ;;  %v6460_v33 = vld [vmem:[%s7680_s3 + $0x3f0] sm:$0xff]  ;;  %v6446_v63 = vld [vmem:[%s7680_s3 + $0x380] sm:$0xff] }
 0x35d   : > { %v3128_v17 = vrot.slane %v3126_v15, 1  ;;  %v3135_v18 = vrot.slane %v3133_v16, 1  ;;  %v6415_v15 = vld [vmem:[%s7680_s3 + $0x288] sm:$0xff] }
 0x35e   : > { %3957 = vmatpush.bf16.msrb.mxu0 %v6404_v11  ;;  %3970 = vmatpush.bf16.msrb.mxu1 %v6412_v12  ;;  %v7512_v43 = vld [vmem:[#allocation3 + $0x18] sm:$0x11]  ;;  %v3729_v4 = vshrl.u32 %v3724_v46, 16  ;;  %v3732_v5 = vshll.u32 %v3724_v46, 16  ;;  %v3737_v61 = vshrl.u32 %v3725_v48, 16  ;;  %v3740_v6 = vshll.u32 %v3725_v48, 16 }
 0x35f   : > { %v3129_v23 = vor.u32 %v3128_v17, %v3124_v13  ;;  %v3136_v25 = vor.u32 %v3135_v18, %v3131_v54  ;;  %v3722_v0 = vunpack.c.l.b16 %v7512_v43  ;;  %v3723_v53 = vunpack.c.h.b16 %v7512_v43  ;;  %v6437_v11 = vld [vmem:[%s7680_s3 + $0x338] sm:$0xff]  ;;  %v6423_v16 = vld [vmem:[%s7680_s3 + $0x2c8] sm:$0xff]  ;;  %v6440_v46 = vld [vmem:[%s7680_s3 + $0x350] sm:$0xff] }
 0x360   : > { %v6445_v12 = vld [vmem:[%s7680_s3 + $0x378] sm:$0xff]  ;;  %v3731_v13 = vrot.slane %v3729_v4, 1  ;;  %v3734_v17 = vrot.slane %v3732_v5, 2  ;;  %v3739_v54 = vrot.slane %v3737_v61, 1  ;;  %v3742_v18 = vrot.slane %v3740_v6, 2  ;;  %v6438_v4 = vld [vmem:[%s7680_s3 + $0x340] sm:$0xff] }
 0x361   : > { %3367 = vmatmul.bf16.vlgmr.msrb.gmra.mxu2 %v3129_v23  ;;  %3380 = vmatmul.bf16.vlgmr.msrb.gmra.mxu3 %v3136_v25  ;;  %v3726_v56 = vpack.c.b16 %v3722_v0, %v3718_v59  ;;  %v3727_v10 = vpack.c.b16 %v3723_v53, %v3719_v55  ;;  %v6449_v48 = vld [vmem:[%s7680_s3 + $0x398] sm:$0xff]  ;;  %v6448_v55 = vld [vmem:[%s7680_s3 + $0x390] sm:$0xff]  ;;  %v6447_v6 = vld [vmem:[%s7680_s3 + $0x388] sm:$0xff] }
 0x362   : > { %3982 = vmatpush.bf16.msrb.mxu2 %v6421_v19  ;;  %3995 = vmatpush.bf16.msrb.mxu3 %v6429_v20 }
 0x363   : > { %3958 = vmatpush.bf16.msrb.mxu0 %v6403_v35  ;;  %3971 = vmatpush.bf16.msrb.mxu1 %v6411_v36  ;;  %v3745_v19 = vshrl.u32 %v3726_v56, 16  ;;  %v3748_v20 = vshll.u32 %v3726_v56, 16  ;;  %v3753_v23 = vshrl.u32 %v3727_v10, 16  ;;  %v3756_v25 = vshll.u32 %v3727_v10, 16  ;;  %v6436_v35 = vld [vmem:[%s7680_s3 + $0x330] sm:$0xff] }
 0x364   : > { %v6444_v36 = vld [vmem:[%s7680_s3 + $0x370] sm:$0xff] }
 0x365   : > { %v3750_v37 = vrot.slane %v3748_v20, 2  ;;  %v3755_v28 = vrot.slane %v3753_v23, 1  ;;  %v3758_v47 = vrot.slane %v3756_v25, 2 }
 0x366   : > { %3983 = vmatpush.bf16.msrb.mxu2 %v6420_v21  ;;  %3996 = vmatpush.bf16.msrb.mxu3 %v6428_v26  ;;  %v6414_v21 = vld [vmem:[%s7680_s3 + $0x280] sm:$0xff] }
 0x367   : > { %3959 = vmatpush.bf16.msrb.mxu0 %v6402_v29  ;;  %3972 = vmatpush.bf16.msrb.mxu1 %v6410_v30  ;;  %v6422_v26 = vld [vmem:[%s7680_s3 + $0x2c0] sm:$0xff]  ;;  %v3735_v29 = vor.u32 %v3734_v17, %v3731_v13  ;;  %v3743_v30 = vor.u32 %v3742_v18, %v3739_v54 }
 0x369   : > { %3599 = vmatmul.bf16.vlgmr.msra.gmra.mxu0 %v3391_v14  ;;  %3612 = vmatmul.bf16.vlgmr.msra.gmra.mxu1 %v3392_v38  ;;  %v6442_v14 = vld [vmem:[%s7680_s3 + $0x360] sm:$0xff]  ;;  %v6451_v38 = vld [vmem:[%s7680_s3 + $0x3a8] sm:$0xff] }
 0x36a   : > { %3984 = vmatpush.bf16.msrb.mxu2 %v6419_v32  ;;  %3997 = vmatpush.bf16.msrb.mxu3 %v6427_v3  ;;  %v6461_v32 = vld [vmem:[%s7680_s3 + $0x3f8] sm:$0xff]  ;;  %v3747_v3 = vrot.slane %v3745_v19, 1 }
 0x36b   : > { %3960 = vmatpush.bf16.msrb.mxu0 %v6401_v27  ;;  %3973 = vmatpush.bf16.msrb.mxu1 %v6409_v62  ;;  %v6435_v27 = vld [vmem:[%s7680_s3 + $0x328] sm:$0xff] }
 0x36c   : > { %v6443_v62 = vld [vmem:[%s7680_s3 + $0x368] sm:$0xff]  ;;  %v3751_v34 = vor.u32 %v3750_v37, %v3747_v3 }
 0x36e   : > { %3985 = vmatpush.bf16.msrb.mxu2 %v6418_v2  ;;  %3998 = vmatpush.bf16.msrb.mxu3 %v6426_v9  ;;  %v3759_v2 = vor.u32 %v3758_v47, %v3755_v28  ;;  %v6434_v9 = vld [vmem:[%s7680_s3 + $0x320] sm:$0xff] }
 0x36f   : > { %3961 = vmatpush.bf16.msrb.mxu0 %v6400_v40  ;;  %3974 = vmatpush.bf16.msrb.mxu1 %v6408_v24  ;;  %v6459_v40 = vld [vmem:[%s7680_s3 + $0x3e8] sm:$0xff]  ;;  %v6433_v24 = vld [vmem:[%s7680_s3 + $0x318] sm:$0xff] }
 0x371   : > { %3625 = vmatmul.bf16.vlgmr.msra.gmra.mxu2 %v3393_v57  ;;  %3638 = vmatmul.bf16.vlgmr.msra.gmra.mxu3 %v3394_v58  ;;  %v6439_v57 = vld [vmem:[%s7680_s3 + $0x348] sm:$0xff] }
 0x372   : > { %3986 = vmatpush.bf16.msrb.mxu2 %v6417_v44  ;;  %3999 = vmatpush.bf16.msrb.mxu3 %v6425_v45  ;;  %v6458_v44 = vld [vmem:[%s7680_s3 + $0x3e0] sm:$0xff]  ;;  %v6432_v45 = vld [vmem:[%s7680_s3 + $0x310] sm:$0xff] }
 0x373   : > { %3962 = vmatpush.bf16.msrb.mxu0 %v6399_v50  ;;  %3975 = vmatpush.bf16.msrb.mxu1 %v6407_v51  ;;  %v4009_v50 = vld [vmem:[#allocation3] sm:$0xcc]  ;;  %v6431_v51 = vld [vmem:[%s7680_s3 + $0x308] sm:$0xff] }
 0x374   : > { %v4078_v58 = vunpack.c.l.b16 %v4009_v50  ;;  %v4079_v59 = vunpack.c.h.b16 %v4009_v50 }
 0x376   : > { %3987 = vmatpush.bf16.msrb.mxu2 %v6416_v60  ;;  %4000 = vmatpush.bf16.msrb.mxu3 %v6424_v1  ;;  %v6456_v60 = vld [vmem:[%s7680_s3 + $0x3d0] sm:$0xff]  ;;  %v6430_v1 = vld [vmem:[%s7680_s3 + $0x300] sm:$0xff]  ;;  %v4082_v5 = vpack.c.b16 %v3720_v39, %v4078_v58  ;;  %v4083_v61 = vpack.c.b16 %v3721_v22, %v4079_v59 }
 0x377   : > { %3963 = vmatpush.bf16.msrb.mxu0 %v6398_v7  ;;  %3976 = vmatpush.bf16.msrb.mxu1 %v6406_v8  ;;  %v6455_v7 = vld [vmem:[%s7680_s3 + $0x3c8] sm:$0xff]  ;;  %v6454_v22 = vld [vmem:[%s7680_s3 + $0x3c0] sm:$0xff] }
 0x378   : > { %v4010_v8 = vld [vmem:[#allocation3 + $0x8] sm:$0xcc]  ;;  %v4086_v56 = vrot.slane %v4082_v5, 2  ;;  %v4087_v10 = vrot.slane %v4083_v61, 2  ;;  %v6486_v59 = vld [vmem:[%s7683_s6] ss:$0 sm:$0xff] }
 0x379   : > { %v4081_v39 = vunpack.c.h.b16 %v4010_v8  ;;  %v4347_v61 = vld [vmem:[%s7686_s9] sm:$0x3f] }
 0x37a   : > { %3988 = vmatpush.bf16.msrb.mxu2 %v6415_v15  ;;  %4001 = vmatpush.bf16.msrb.mxu3 %v6423_v16 }
 0x37b   : > { %4286 = vmatpush.bf16.msra.mxu0 %v6437_v11  ;;  %4299 = vmatpush.bf16.msra.mxu1 %v6445_v12  ;;  %v4080_v11 = vunpack.c.l.b16 %v4010_v8  ;;  %v4085_v15 = vpack.c.b16 %v3723_v53, %v4081_v39 }
 0x37c   : > { %3964 = vmatmul.bf16.vlgmr.msrb.gmra.mxu0 %v3735_v29  ;;  %3977 = vmatmul.bf16.vlgmr.msrb.gmra.mxu1 %v3743_v30 }
 0x37d   : > { %v4084_v12 = vpack.c.b16 %v3722_v0, %v4080_v11  ;;  %v4089_v13 = vrot.slane %v4085_v15, 2 }
 0x37e   : > { %3989 = vmatpush.bf16.msrb.mxu2 %v6414_v21  ;;  %4002 = vmatpush.bf16.msrb.mxu3 %v6422_v26 }
 0x37f   : > { %4287 = vmatpush.bf16.msra.mxu0 %v6436_v35  ;;  %4300 = vmatpush.bf16.msra.mxu1 %v6444_v36  ;;  %v4088_v16 = vrot.slane %v4084_v12, 2  ;;  %v4359_v12 = vld [vmem:[#allocation4] sm:$0x1] }
 0x381   : > { %3990 = vmatmul.bf16.vlgmr.msrb.gmra.mxu2 %v3751_v34  ;;  %4003 = vmatmul.bf16.vlgmr.msrb.gmra.mxu3 %v3759_v2 }
 0x382   : > { %4312 = vmatpush.bf16.msra.mxu2 %v6453_v31  ;;  %4325 = vmatpush.bf16.msra.mxu3 %v6461_v32 }
 0x383   : > { %4288 = vmatpush.bf16.msra.mxu0 %v6435_v27  ;;  %4301 = vmatpush.bf16.msra.mxu1 %v6443_v62 }
 0x386   : > { %4313 = vmatpush.bf16.msra.mxu2 %v6452_v52  ;;  %4326 = vmatpush.bf16.msra.mxu3 %v6460_v33 }
 0x387   : > { %4289 = vmatpush.bf16.msra.mxu0 %v6434_v9  ;;  %4302 = vmatpush.bf16.msra.mxu1 %v6442_v14 }
 0x38a   : > { %4314 = vmatpush.bf16.msra.mxu2 %v6451_v38  ;;  %4327 = vmatpush.bf16.msra.mxu3 %v6459_v40 }
 0x38b   : > { %4290 = vmatpush.bf16.msra.mxu0 %v6433_v24  ;;  %4303 = vmatpush.bf16.msra.mxu1 %v6441_v41 }
 0x38e   : > { %4315 = vmatpush.bf16.msra.mxu2 %v6450_v42  ;;  %4328 = vmatpush.bf16.msra.mxu3 %v6458_v44 }
 0x38f   : > { %4291 = vmatpush.bf16.msra.mxu0 %v6432_v45  ;;  %4304 = vmatpush.bf16.msra.mxu1 %v6440_v46 }
 0x392   : > { %4316 = vmatpush.bf16.msra.mxu2 %v6449_v48  ;;  %4329 = vmatpush.bf16.msra.mxu3 %v6457_v49 }
 0x393   : > { %4292 = vmatpush.bf16.msra.mxu0 %v6431_v51  ;;  %4305 = vmatpush.bf16.msra.mxu1 %v6439_v57 }
 0x396   : > { %4317 = vmatpush.bf16.msra.mxu2 %v6448_v55  ;;  %4330 = vmatpush.bf16.msra.mxu3 %v6456_v60 }
 0x397   : > { %4293 = vmatpush.bf16.msra.mxu0 %v6430_v1  ;;  %4306 = vmatpush.bf16.msra.mxu1 %v6438_v4 }
 0x39a   : > { %4318 = vmatpush.bf16.msra.mxu2 %v6447_v6  ;;  %4331 = vmatpush.bf16.msra.mxu3 %v6455_v7 }
 0x39b   : > { %4294 = vmatmul.bf16.vlgmr.msra.gmra.mxu0 %v4086_v56  ;;  %4307 = vmatmul.bf16.vlgmr.msra.gmra.mxu1 %v4087_v10 }
 0x39e   : > { %4319 = vmatpush.bf16.msra.mxu2 %v6446_v63  ;;  %4332 = vmatpush.bf16.msra.mxu3 %v6454_v22 }
 0x3a1   : > { %4320 = vmatmul.bf16.vlgmr.msra.gmra.mxu2 %v4088_v16  ;;  %4333 = vmatmul.bf16.vlgmr.msra.gmra.mxu3 %v4089_v13 }
 0x3d6   : > { %v3342_v17 = vpop.f32.mrf.mxu0  ;;  %v3355_v54 = vpop.f32.mrf.mxu1 }
 0x3d7   : > { %v3356_v52 = vadd.f32 %v3355_v54, %v3342_v17 }
 0x3de   : > { %v3344_v18 = vpop.f32.mrf.mxu0  ;;  %v3357_v19 = vpop.f32.mrf.mxu1 }
 0x3e4   : > { %v3368_v20 = vpop.f32.mrf.mxu2  ;;  %v3381_v23 = vpop.f32.mrf.mxu3 }
 0x3e5   : > { %v3369_v33 = vadd.f32 %v3368_v20, %v3356_v52 }
 0x3e6   : > { %v3600_v25 = vpop.f32.mrf.mxu0  ;;  %v3613_v35 = vpop.f32.mrf.mxu1 }
 0x3e7   : > { %v3382_v34 = vadd.f32 %v3381_v23, %v3369_v33 }
 0x3e9   : > { %v3601_v14 = vadd.f32 %v3600_v25, %v3382_v34 }
 0x3eb   : > { %v3614_v40 = vadd.f32 %v3613_v35, %v3601_v14 }
 0x3ec   : > { %v3370_v36 = vpop.f32.mrf.mxu2  ;;  %v3383_v21 = vpop.f32.mrf.mxu3 }
 0x3ee   : > { %v3602_v0 = vpop.f32.mrf.mxu0  ;;  %v3615_v26 = vpop.f32.mrf.mxu1 }
 0x3f4   : > { %v3626_v43 = vpop.f32.mrf.mxu2  ;;  %v3639_v53 = vpop.f32.mrf.mxu3 }
 0x3f5   : > { %v3627_v44 = vadd.f32 %v3626_v43, %v3614_v40 }
 0x3f7   : > { %v3640_v50 = vadd.f32 %v3639_v53, %v3627_v44 }
 0x3f9   : > { %v3965_v29 = vpop.f32.mrf.mxu0  ;;  %v3978_v30 = vpop.f32.mrf.mxu1 }
 0x3fa   : > { %v3979_v38 = vadd.f32 %v3978_v30, %v3965_v29 }
 0x3fc   : > { %v3628_v31 = vpop.f32.mrf.mxu2  ;;  %v3641_v32 = vpop.f32.mrf.mxu3 }
 0x401   : > { %v3967_v3 = vpop.f32.mrf.mxu0  ;;  %v3980_v37 = vpop.f32.mrf.mxu1 }
 0x404   : > { %v3991_v28 = vpop.f32.mrf.mxu2  ;;  %v4004_v47 = vpop.f32.mrf.mxu3 }
 0x405   : > { %v3992_v24 = vadd.f32 %v3991_v28, %v3979_v38 }
 0x407   : > { %v4005_v45 = vadd.f32 %v4004_v47, %v3992_v24 }
 0x409   : > { %v4008_v57 = vadd.f32 %v4005_v45, %v3640_v50 }
 0x40c   : > { %v3993_v27 = vpop.f32.mrf.mxu2  ;;  %v4006_v62 = vpop.f32.mrf.mxu3 }
 0x418   : > { %v4295_v2 = vpop.f32.mrf.mxu0  ;;  %v4308_v9 = vpop.f32.mrf.mxu1 }
 0x419   : > { %v4309_v46 = vadd.f32 %v4308_v9, %v4295_v2 }
 0x420   : > { %v4297_v41 = vpop.f32.mrf.mxu0  ;;  %v4310_v42 = vpop.f32.mrf.mxu1 }
 0x424   : > { %v4321_v48 = vpop.f32.mrf.mxu2  ;;  %v4334_v49 = vpop.f32.mrf.mxu3 }
 0x425   : > { %v4322_v51 = vadd.f32 %v4321_v48, %v4309_v46 }
 0x427   : > { %v4335_v58 = vadd.f32 %v4334_v49, %v4322_v51 }
 0x429   : > { %v4338_v55 = vadd.f32 %v4335_v58, %v4008_v57 }
 0x42b   : > { %v4343_v60 = vadd.f32 %v6486_v59, %v4338_v55 }
 0x42c   : > { %v4323_v1 = vpop.f32.mrf.mxu2  ;;  %v4336_v4 = vpop.f32.mrf.mxu3 }
 0x42d   : > { %vm4344_vm4 = vcmp.ge.f32.partialorder %v4343_v60, 0.0  ;;  %v4345_v5 = vmul.f32 0.1, %v4343_v60 }
 0x42f   : > { %v4346_v6 = vsel %vm4344_vm4, %v4343_v60, %v4345_v5 }
 0x430   : > { %v4348_v7 = vmul.f32 %v4347_v61, %v4346_v6 }
 0x432   : > { %v4350_v8 = vsel %vm4349_vm5, %v4348_v7, 0.0 }
 0x433   : > { %v4351_v56 = vrot.slane %v4350_v8, 4 }
 0x435   : > { %v4352_v10 = vadd.f32 %v4351_v56, %v4350_v8 }
 0x437   : > { %v4353_v11 = vrot.slane %v4352_v10, 2 }
 0x439   : > { %v4354_v39 = vadd.f32 %v4353_v11, %v4352_v10 }
 0x43b   : > { %v4355_v63 = vrot.slane %v4354_v39, 1 }
 0x43d   : > { %v4356_v22 = vadd.f32 %v4355_v63, %v4354_v39 }
 0x43f   : > { %4357 = vadd.xlane.f32.xlu0 %v4356_v22 }
 0x4b2   : > { %v4358_v15 = vpop.xlane.xlu0 %4357 }
 0x4b3   : > { %v4360_v16 = vadd.f32 %v4359_v12, %v4358_v15 }
 0x4b5   : > { %4362 = vst.msk [vmem:[%s401_s13] sm:$0x1] %vm4361_vm6, %v4360_v16 }
 0x4b6 PF: > { %s24_s19 = sadd.s32 1, %s6530_s19  }
 0x4b7   : > { %p21_p7 = scmp.ge.s32.totalorder %s24_s19, 4  }
 0x4b9   :  { %23 = sbr.rel (!%p21_p7) target bundleno = 4 (0x4), region = 114 }
 0x4be   :  { %4380 = vsyncpa [#allocation6], 1 }
 0x4bf   :  { %4382 = vsyncpa [#allocation6 + $0x1], 1 }

</bundles_post_ra>
